<compile_context>
chip_gen: v7x
topology: tpu7x:2x2x1
jax: 0.10.0
libtpu: 0.0.40
codegen_flags: <defaults>
</compile_context>

<pallas_src>
import math
import jax
import jax.numpy as jnp
from jax.experimental import pallas as pl
from jax.experimental.pallas import tpu as pltpu

# ---------------- config ----------------
H = 128          # hidden size (stands in for 768)
NH = 4           # attention heads
DH = H // NH     # head dim
FF = 512         # intermediate size
L = 2            # encoder layers
VOCAB = 1000
TYPE_VOCAB = 2
MAX_POS = 64
NUM_LABELS = 100
CLS_PAD = 128    # lane-dense classifier width (logits sliced to 100 in the wrapper)
B, S = 2, 8
T = B * S

# Packed small-parameter slab: (L, 8 rows, W_PACK lanes)
W_PACK = max(3 * H, FF)   # 512
ROW_BQKV, ROW_B1, ROW_BO, ROW_B2 = 0, 1, 2, 3
ROW_LN1G, ROW_LN1B, ROW_LN2G, ROW_LN2B = 4, 5, 6, 7


# ---------------- in-kernel helpers (kept in f32 for v5e VPU/EUP) ----------------
def _ln(x, g, b):
    """LayerNorm over the last axis (eps matches BERT)."""
    mean = jnp.mean(x, axis=-1, keepdims=True)
    cent = x - mean
    var = jnp.mean(cent * cent, axis=-1, keepdims=True)
    return cent * jax.lax.rsqrt(var + 1e-12) * g + b


def _gelu(y):
    # TODO(synk): HF BERT uses exact erf GELU; tanh approximation used (EUP tanh path).
    return 0.5 * y * (1.0 + jnp.tanh(0.7978845608028654 * (y + 0.044715 * y * y * y)))


# ---------------- fused encoder + pooler + classifier kernel (grid over layers) ----------------
def _bert_kernel(x_emb_ref, bias_ref, eln_ref,
                 wqkv_ref, wo_ref, w1_ref, w2_ref, vec_ref,
                 head_w_ref, head_b_ref,
                 logits_ref, x_scr, ctx_scr):
    l = pl.program_id(0)

    @pl.when(l == 0)
    def _():
        # Embedding LayerNorm folded into the first grid step (no zeros-residual tensor).
        x_scr[...] = _ln(x_emb_ref[...], eln_ref[0:1, :], eln_ref[1:2, :])

    x = x_scr[...]                 # (T, H) f32, resident across layers
    bias = bias_ref[...]           # (T, T) block-diagonal additive attention bias

    # Fused QKV projection: bf16 operands, f32 accumulation.
    qkv = jnp.dot(x.astype(jnp.bfloat16), wqkv_ref[...],
                  preferred_element_type=jnp.float32) + vec_ref[ROW_BQKV:ROW_BQKV + 1, 0:3 * H]

    # Per-head attention over ALL tokens at once (block-diag mask handles batch separation).
    # Each head's context is written directly into the ctx scratch slab — no concatenates.
    scale = 1.0 / math.sqrt(DH)
    for h in range(NH):
        c0 = h * DH
        qh = qkv[:, c0:c0 + DH]                      # (T, DH)
        kh = qkv[:, H + c0:H + c0 + DH]
        vh = qkv[:, 2 * H + c0:2 * H + c0 + DH]
        s = jax.lax.dot_general(qh, kh, (((1,), (1,)), ((), ())),
                                preferred_element_type=jnp.float32) * scale + bias
        s = s - jnp.max(s, axis=-1, keepdims=True)
        p = jnp.exp(s)
        # Approximate EUP reciprocal: fine for inference; use exact division for parity tests.
        p = p * pl.reciprocal(jnp.sum(p, axis=-1, keepdims=True), approx=True)
        ctx_scr[:, c0:c0 + DH] = jnp.dot(p, vh, preferred_element_type=jnp.float32)

    # Attention output projection + residual + LN1.
    attn = jnp.dot(ctx_scr[...].astype(jnp.bfloat16), wo_ref[...],
                   preferred_element_type=jnp.float32) + vec_ref[ROW_BO:ROW_BO + 1, 0:H]
    x1 = _ln(attn + x,
             vec_ref[ROW_LN1G:ROW_LN1G + 1, 0:H], vec_ref[ROW_LN1B:ROW_LN1B + 1, 0:H])

    # FFN: (T,H)@(H,FF) -> gelu -> (T,FF)@(FF,H), residual + LN2.
    inter = jnp.dot(x1.astype(jnp.bfloat16), w1_ref[...],
                    preferred_element_type=jnp.float32) + vec_ref[ROW_B1:ROW_B1 + 1, 0:FF]
    inter = _gelu(inter)
    ffn = jnp.dot(inter.astype(jnp.bfloat16), w2_ref[...],
                  preferred_element_type=jnp.float32) + vec_ref[ROW_B2:ROW_B2 + 1, 0:H]
    x2 = _ln(ffn + x1,
             vec_ref[ROW_LN2G:ROW_LN2G + 1, 0:H], vec_ref[ROW_LN2B:ROW_LN2B + 1, 0:H])

    x_scr[...] = x2   # carry to next layer (stays in VMEM; no per-layer HBM store)

    # Fused head on the last layer step: pooler (tanh dense on CLS rows), Dropout(0.4) is
    # identity in eval mode, then the classifier at lane-dense width 128.
    @pl.when(l == pl.num_programs(0) - 1)
    def _():
        cls = x_scr[pl.ds(0, B, stride=S), :]                      # CLS rows 0, S, 2S, ... -> (B, H)
        pooled = jnp.tanh(
            jnp.dot(cls.astype(jnp.bfloat16), head_w_ref[:, 0:H],
                    preferred_element_type=jnp.float32) + head_b_ref[:, 0:H])
        logits_ref[...] = (
            jnp.dot(pooled.astype(jnp.bfloat16), head_w_ref[:, H:H + CLS_PAD],
                    preferred_element_type=jnp.float32) + head_b_ref[:, H:H + CLS_PAD])


def _vmem_limit_bytes():
    bf16, f32 = 2, 4
    # double-buffered per-layer streamed weights + packed small-param slab
    stream = 2 * bf16 * (H * 3 * H + H * H + H * FF + FF * H) + 2 * f32 * 8 * W_PACK
    # constant-index inputs / output (conservatively also x2 for double-buffering)
    resident = 2 * (f32 * (T * H + T * T + 2 * H + B * CLS_PAD + (H + CLS_PAD))
                    + bf16 * H * (H + CLS_PAD))
    scratch = f32 * 2 * T * H
    est = 4 * (stream + resident + scratch)          # generous headroom
    return min(max(est, 16 * 1024 * 1024), 64 * 1024 * 1024)


def run_bert(x_emb, attn_bias, eln, layers, head_w, head_b):
    return pl.pallas_call(
        _bert_kernel,
        out_shape=jax.ShapeDtypeStruct((B, CLS_PAD), jnp.float32),
        grid=(L,),
        in_specs=[
            pl.BlockSpec((T, H), lambda l: (0, 0)),                 # embeddings (read at l==0)
            pl.BlockSpec((T, T), lambda l: (0, 0)),                 # block-diag attention bias
            pl.BlockSpec((2, H), lambda l: (0, 0)),                 # emb LN gamma/beta
            pl.BlockSpec((None, H, 3 * H), lambda l: (l, 0, 0)),    # wqkv  (stacked over L, bf16)
            pl.BlockSpec((None, H, H), lambda l: (l, 0, 0)),        # wo
            pl.BlockSpec((None, H, FF), lambda l: (l, 0, 0)),       # w1
            pl.BlockSpec((None, FF, H), lambda l: (l, 0, 0)),       # w2
            pl.BlockSpec((None, 8, W_PACK), lambda l: (l, 0, 0)),   # packed biases + LN params
            pl.BlockSpec((H, H + CLS_PAD), lambda l: (0, 0)),       # pooler|classifier weights
            pl.BlockSpec((1, H + CLS_PAD), lambda l: (0, 0)),       # pooler|classifier biases
        ],
        out_specs=pl.BlockSpec((B, CLS_PAD), lambda l: (0, 0)),     # padded logits (written once)
        scratch_shapes=[pltpu.VMEM((T, H), jnp.float32),            # resident activation carry
                        pltpu.VMEM((T, H), jnp.float32)],           # attention context slab
        compiler_params=pltpu.CompilerParams(
            dimension_semantics=("arbitrary",),                     # layers are sequential
            vmem_limit_bytes=_vmem_limit_bytes()),
    )(x_emb, attn_bias, eln, layers["wqkv"], layers["wo"], layers["w1"], layers["w2"],
      layers["vec"], head_w, head_b)


# ---------------- parameters (synthetic, deterministic) ----------------
def init_params(key):
    keys = iter(jax.random.split(key, 32))
    nk = lambda: next(keys)

    def norm(shape, dtype=jnp.float32):
        return (0.02 * jax.random.normal(nk(), shape, jnp.float32)).astype(dtype)

    # Per-layer big matmul weights, stacked along L and stored bf16 (halves the DMA stream).
    # NOTE: synthetic weights are (in, out); real HF checkpoints ((out, in)) must be transposed.
    layers = {
        "wqkv": norm((L, H, 3 * H), jnp.bfloat16),   # wq|wk|wv concatenated
        "wo":   norm((L, H, H), jnp.bfloat16),
        "w1":   norm((L, H, FF), jnp.bfloat16),
        "w2":   norm((L, FF, H), jnp.bfloat16),
    }

    # Pack all small per-layer params into one lane-dense (L, 8, W_PACK) f32 slab.
    bqkv = jnp.zeros((L, 3 * H), jnp.float32)
    b1 = jnp.zeros((L, FF), jnp.float32)
    bo = jnp.zeros((L, H), jnp.float32)
    b2 = jnp.zeros((L, H), jnp.float32)
    ln1_g = jnp.ones((L, H), jnp.float32)
    ln1_b = jnp.zeros((L, H), jnp.float32)
    ln2_g = jnp.ones((L, H), jnp.float32)
    ln2_b = jnp.zeros((L, H), jnp.float32)
    vec = jnp.zeros((L, 8, W_PACK), jnp.float32)
    vec = vec.at[:, ROW_BQKV, 0:3 * H].set(bqkv)
    vec = vec.at[:, ROW_B1, 0:FF].set(b1)
    vec = vec.at[:, ROW_BO, 0:H].set(bo)
    vec = vec.at[:, ROW_B2, 0:H].set(b2)
    vec = vec.at[:, ROW_LN1G, 0:H].set(ln1_g)
    vec = vec.at[:, ROW_LN1B, 0:H].set(ln1_b)
    vec = vec.at[:, ROW_LN2G, 0:H].set(ln2_g)
    vec = vec.at[:, ROW_LN2B, 0:H].set(ln2_b)
    layers["vec"] = vec

    # Pooler + classifier packed into one lane-dense weight slab:
    # columns [0:H] = pooler W, [H:H+CLS_PAD] = classifier W padded 100 -> 128.
    pool_w = norm((H, H))
    cls_w = norm((H, NUM_LABELS))
    head_w = jnp.concatenate(
        [pool_w, jnp.pad(cls_w, ((0, 0), (0, CLS_PAD - NUM_LABELS)))], axis=1
    ).astype(jnp.bfloat16)
    head_b = jnp.zeros((1, H + CLS_PAD), jnp.float32)

    return {
        "word_emb": norm((VOCAB, H)),
        "pos_emb": norm((MAX_POS, H)),
        "type_emb": norm((TYPE_VOCAB, H)),
        "eln": jnp.concatenate([jnp.ones((1, H), jnp.float32),
                                jnp.zeros((1, H), jnp.float32)], axis=0),
        "layers": layers,
        "head_w": head_w,
        "head_b": head_b,
    }


# ---------------- forward (BERTClass.forward) ----------------
def bert_class_forward(params, ids, mask, token_type_ids):
    Bq, Sq = ids.shape

    # Embedding table gathers stay as plain-JAX glue feeding the kernel.
    emb = (params["word_emb"][ids]
           + params["pos_emb"][jnp.arange(Sq)][None, :, :]
           + params["type_emb"][token_type_ids])
    x_emb = emb.reshape(Bq * Sq, H).astype(jnp.float32)

    # Block-diagonal additive attention bias over flattened tokens:
    #   0 for (same batch AND key unmasked), -10000 otherwise (BERT convention).
    tok_batch = jnp.arange(Bq * Sq) // Sq
    same = tok_batch[:, None] == tok_batch[None, :]
    keep = (mask.reshape(Bq * Sq) > 0)[None, :]
    attn_bias = jnp.where(same & keep, 0.0, -10000.0).astype(jnp.float32)

    # One fused pallas_call: embedding LN + L transformer layers + pooler + classifier.
    logits_pad = run_bert(x_emb, attn_bias, params["eln"], params["layers"],
                          params["head_w"], params["head_b"])
    return logits_pad[:, :NUM_LABELS]


if __name__ == "__main__":
    key = jax.random.PRNGKey(0)
    kp, ki = jax.random.split(key)
    params = init_params(kp)

    ids = jax.random.randint(ki, (B, S), 0, VOCAB, dtype=jnp.int32)
    mask = jnp.ones((B, S), dtype=jnp.int32)
    token_type_ids = jnp.zeros((B, S), dtype=jnp.int32)

    fwd = jax.jit(bert_class_forward)
    out = jax.block_until_ready(fwd(params, ids, mask, token_type_ids))
    assert out.shape == (B, NUM_LABELS) and out.dtype == jnp.float32
    assert bool(jnp.all(jnp.isfinite(out)))
    print("KERNEL_OK")
</pallas_src>

<mosaic_0001>
module attributes {stable_mosaic.version = 11 : i64} {
  func.func @_bert_kernel(%arg0: i32, %arg1: memref<16x128xf32, #tpu.memory_space<vmem>>, %arg2: memref<16x16xf32, #tpu.memory_space<vmem>>, %arg3: memref<2x128xf32, #tpu.memory_space<vmem>>, %arg4: memref<1x128x384xbf16, #tpu.memory_space<vmem>>, %arg5: memref<1x128x128xbf16, #tpu.memory_space<vmem>>, %arg6: memref<1x128x512xbf16, #tpu.memory_space<vmem>>, %arg7: memref<1x512x128xbf16, #tpu.memory_space<vmem>>, %arg8: memref<1x8x512xf32, #tpu.memory_space<vmem>>, %arg9: memref<128x256xbf16, #tpu.memory_space<vmem>>, %arg10: memref<1x256xf32, #tpu.memory_space<vmem>>, %arg11: memref<2x128xf32, #tpu.memory_space<vmem>>, %arg12: memref<16x128xf32, #tpu.memory_space<vmem>>, %arg13: memref<16x128xf32, #tpu.memory_space<vmem>>) attributes {dimension_semantics = [#tpu.dimension_semantics<arbitrary>], iteration_bounds = array<i64: 2>, scalar_prefetch = 0 : i64, scratch_operands = 2 : i64, tpu.core_type = #tpu.core_type<tc>, window_params = [{pipeline_mode = #tpu.pipeline_mode<synchronous>, transform_indices = @transform_0, window_bounds = array<i64: 16, 128>}, {pipeline_mode = #tpu.pipeline_mode<synchronous>, transform_indices = @transform_1, window_bounds = array<i64: 16, 16>}, {pipeline_mode = #tpu.pipeline_mode<synchronous>, transform_indices = @transform_2, window_bounds = array<i64: 2, 128>}, {transform_indices = @transform_3, window_bounds = array<i64: 1, 128, 384>}, {transform_indices = @transform_4, window_bounds = array<i64: 1, 128, 128>}, {transform_indices = @transform_5, window_bounds = array<i64: 1, 128, 512>}, {transform_indices = @transform_6, window_bounds = array<i64: 1, 512, 128>}, {transform_indices = @transform_7, window_bounds = array<i64: 1, 8, 512>}, {pipeline_mode = #tpu.pipeline_mode<synchronous>, transform_indices = @transform_8, window_bounds = array<i64: 128, 256>}, {pipeline_mode = #tpu.pipeline_mode<synchronous>, transform_indices = @transform_9, window_bounds = array<i64: 1, 256>}, {pipeline_mode = #tpu.pipeline_mode<synchronous>, transform_indices = @transform_10, window_bounds = array<i64: 2, 128>}]} {
    %c0_i32 = arith.constant 0 : i32
    %0 = arith.cmpi eq, %arg0, %c0_i32 : i32
    %1 = arith.extui %0 : i1 to i32
    %c0_i32_0 = arith.constant 0 : i32
    %2 = arith.cmpi ne, %1, %c0_i32_0 : i32
    scf.if %2 {
      %c0_80 = arith.constant 0 : index
      %c0_81 = arith.constant 0 : index
      %181 = vector.load %arg1[%c0_80, %c0_81] : memref<16x128xf32, #tpu.memory_space<vmem>>, vector<16x128xf32>
      %c0_82 = arith.constant 0 : index
      %c0_83 = arith.constant 0 : index
      %182 = vector.load %arg3[%c0_82, %c0_83] : memref<2x128xf32, #tpu.memory_space<vmem>>, vector<1x128xf32>
      %c1_84 = arith.constant 1 : index
      %c0_85 = arith.constant 0 : index
      %183 = vector.load %arg3[%c1_84, %c0_85] : memref<2x128xf32, #tpu.memory_space<vmem>>, vector<1x128xf32>
      %cst_86 = arith.constant dense<0.000000e+00> : vector<16xf32>
      %184 = vector.multi_reduction <add>, %181, %cst_86 [1] : vector<16x128xf32> to vector<16xf32>
      %185 = vector.shape_cast %184 : vector<16xf32> to vector<16x1xf32>
      %cst_87 = arith.constant 1.280000e+02 : f32
      %186 = vector.broadcast %cst_87 : f32 to vector<16x1xf32>
      %187 = arith.divf %185, %186 : vector<16x1xf32>
      %188 = vector.broadcast %187 : vector<16x1xf32> to vector<16x128xf32>
      %189 = arith.subf %181, %188 : vector<16x128xf32>
      %190 = arith.mulf %189, %189 : vector<16x128xf32>
      %cst_88 = arith.constant dense<0.000000e+00> : vector<16xf32>
      %191 = vector.multi_reduction <add>, %190, %cst_88 [1] : vector<16x128xf32> to vector<16xf32>
      %192 = vector.shape_cast %191 : vector<16xf32> to vector<16x1xf32>
      %cst_89 = arith.constant 1.280000e+02 : f32
      %193 = vector.broadcast %cst_89 : f32 to vector<16x1xf32>
      %194 = arith.divf %192, %193 : vector<16x1xf32>
      %cst_90 = arith.constant 9.99999996E-13 : f32
      %195 = vector.broadcast %cst_90 : f32 to vector<16x1xf32>
      %196 = arith.addf %194, %195 : vector<16x1xf32>
      %197 = math.rsqrt %196 : vector<16x1xf32>
      %198 = vector.broadcast %197 : vector<16x1xf32> to vector<16x128xf32>
      %199 = arith.mulf %189, %198 : vector<16x128xf32>
      %200 = vector.broadcast %182 : vector<1x128xf32> to vector<16x128xf32>
      %201 = arith.mulf %199, %200 : vector<16x128xf32>
      %202 = vector.broadcast %183 : vector<1x128xf32> to vector<16x128xf32>
      %203 = arith.addf %201, %202 : vector<16x128xf32>
      %c0_91 = arith.constant 0 : index
      %c0_92 = arith.constant 0 : index
      %204 = vector.load %arg12[%c0_91, %c0_92] : memref<16x128xf32, #tpu.memory_space<vmem>>, vector<16x128xf32>
      tpu.vector_store %arg12[%c0_91, %c0_92], %203 {strides = array<i32>} : memref<16x128xf32, #tpu.memory_space<vmem>>, vector<16x128xf32>,
    } else {
    }
    %c0 = arith.constant 0 : index
    %c0_1 = arith.constant 0 : index
    %3 = vector.load %arg12[%c0, %c0_1] : memref<16x128xf32, #tpu.memory_space<vmem>>, vector<16x128xf32>
    %c0_2 = arith.constant 0 : index
    %c0_3 = arith.constant 0 : index
    %4 = vector.load %arg2[%c0_2, %c0_3] : memref<16x16xf32, #tpu.memory_space<vmem>>, vector<16x16xf32>
    %5 = arith.truncf %3 : vector<16x128xf32> to vector<16x128xbf16>
    %c0_4 = arith.constant 0 : index
    %c0_5 = arith.constant 0 : index
    %c0_6 = arith.constant 0 : index
    %6 = vector.load %arg4[%c0_4, %c0_5, %c0_6] : memref<1x128x384xbf16, #tpu.memory_space<vmem>>, vector<1x128x384xbf16>
    %7 = vector.shape_cast %6 : vector<1x128x384xbf16> to vector<128x384xbf16>
    %cst = arith.constant dense<0.000000e+00> : vector<16x384xf32>
    %8 = tpu.matmul %5, %7, %cst {dimension_numbers = #tpu.dot_dimension_numbers<[1], [0], [0], [1], [0, 0, 1, 1], [], []>} : vector<16x128xbf16>, vector<128x384xbf16>, vector<16x384xf32> -> vector<16x384xf32>
    %c0_7 = arith.constant 0 : index
    %c0_8 = arith.constant 0 : index
    %c0_9 = arith.constant 0 : index
    %9 = vector.load %arg8[%c0_7, %c0_8, %c0_9] : memref<1x8x512xf32, #tpu.memory_space<vmem>>, vector<1x1x384xf32>
    %10 = vector.shape_cast %9 : vector<1x1x384xf32> to vector<1x384xf32>
    %11 = vector.broadcast %10 : vector<1x384xf32> to vector<16x384xf32>
    %12 = arith.addf %8, %11 : vector<16x384xf32>
    %13 = vector.extract_strided_slice %12 {offsets = [0, 0], sizes = [16, 32], strides = [1, 1]} : vector<16x384xf32> to vector<16x32xf32>
    %14 = vector.extract_strided_slice %12 {offsets = [0, 128], sizes = [16, 32], strides = [1, 1]} : vector<16x384xf32> to vector<16x32xf32>
    %15 = vector.extract_strided_slice %12 {offsets = [0, 256], sizes = [16, 32], strides = [1, 1]} : vector<16x384xf32> to vector<16x32xf32>
    %cst_10 = arith.constant dense<0.000000e+00> : vector<16x16xf32>
    %16 = tpu.matmul %13, %14, %cst_10 {dimension_numbers = #tpu.dot_dimension_numbers<[1], [1], [0], [0], [0, 0, 1, 0], [], []>} : vector<16x32xf32>, vector<16x32xf32>, vector<16x16xf32> -> vector<16x16xf32>
    %cst_11 = arith.constant 0.176776692 : f32
    %17 = vector.broadcast %cst_11 : f32 to vector<16x16xf32>
    %18 = arith.mulf %16, %17 : vector<16x16xf32>
    %19 = arith.addf %18, %4 : vector<16x16xf32>
    %cst_12 = arith.constant dense<0xFF800000> : vector<16xf32>
    %20 = vector.multi_reduction <maximumf>, %19, %cst_12 [1] : vector<16x16xf32> to vector<16xf32>
    %21 = vector.shape_cast %20 : vector<16xf32> to vector<16x1xf32>
    %22 = vector.broadcast %21 : vector<16x1xf32> to vector<16x16xf32>
    %23 = arith.subf %19, %22 : vector<16x16xf32>
    %24 = math.exp %23 : vector<16x16xf32>
    %cst_13 = arith.constant dense<0.000000e+00> : vector<16xf32>
    %25 = vector.multi_reduction <add>, %24, %cst_13 [1] : vector<16x16xf32> to vector<16xf32>
    %26 = vector.shape_cast %25 : vector<16xf32> to vector<16x1xf32>
    %27 = tpu.reciprocal %26 {approx = true} : vector<16x1xf32> -> vector<16x1xf32>
    %28 = vector.broadcast %27 : vector<16x1xf32> to vector<16x16xf32>
    %29 = arith.mulf %24, %28 : vector<16x16xf32>
    %cst_14 = arith.constant dense<0.000000e+00> : vector<16x32xf32>
    %30 = tpu.matmul %29, %15, %cst_14 {dimension_numbers = #tpu.dot_dimension_numbers<[1], [0], [0], [1], [0, 0, 1, 1], [], []>} : vector<16x16xf32>, vector<16x32xf32>, vector<16x32xf32> -> vector<16x32xf32>
    %c0_15 = arith.constant 0 : index
    %c0_16 = arith.constant 0 : index
    %31 = vector.load %arg13[%c0_15, %c0_16] : memref<16x128xf32, #tpu.memory_space<vmem>>, vector<16x32xf32>
    tpu.vector_store %arg13[%c0_15, %c0_16], %30 {strides = array<i32>} : memref<16x128xf32, #tpu.memory_space<vmem>>, vector<16x32xf32>,
    %32 = vector.extract_strided_slice %12 {offsets = [0, 32], sizes = [16, 32], strides = [1, 1]} : vector<16x384xf32> to vector<16x32xf32>
    %33 = vector.extract_strided_slice %12 {offsets = [0, 160], sizes = [16, 32], strides = [1, 1]} : vector<16x384xf32> to vector<16x32xf32>
    %34 = vector.extract_strided_slice %12 {offsets = [0, 288], sizes = [16, 32], strides = [1, 1]} : vector<16x384xf32> to vector<16x32xf32>
    %cst_17 = arith.constant dense<0.000000e+00> : vector<16x16xf32>
    %35 = tpu.matmul %32, %33, %cst_17 {dimension_numbers = #tpu.dot_dimension_numbers<[1], [1], [0], [0], [0, 0, 1, 0], [], []>} : vector<16x32xf32>, vector<16x32xf32>, vector<16x16xf32> -> vector<16x16xf32>
    %cst_18 = arith.constant 0.176776692 : f32
    %36 = vector.broadcast %cst_18 : f32 to vector<16x16xf32>
    %37 = arith.mulf %35, %36 : vector<16x16xf32>
    %38 = arith.addf %37, %4 : vector<16x16xf32>
    %cst_19 = arith.constant dense<0xFF800000> : vector<16xf32>
    %39 = vector.multi_reduction <maximumf>, %38, %cst_19 [1] : vector<16x16xf32> to vector<16xf32>
    %40 = vector.shape_cast %39 : vector<16xf32> to vector<16x1xf32>
    %41 = vector.broadcast %40 : vector<16x1xf32> to vector<16x16xf32>
    %42 = arith.subf %38, %41 : vector<16x16xf32>
    %43 = math.exp %42 : vector<16x16xf32>
    %cst_20 = arith.constant dense<0.000000e+00> : vector<16xf32>
    %44 = vector.multi_reduction <add>, %43, %cst_20 [1] : vector<16x16xf32> to vector<16xf32>
    %45 = vector.shape_cast %44 : vector<16xf32> to vector<16x1xf32>
    %46 = tpu.reciprocal %45 {approx = true} : vector<16x1xf32> -> vector<16x1xf32>
    %47 = vector.broadcast %46 : vector<16x1xf32> to vector<16x16xf32>
    %48 = arith.mulf %43, %47 : vector<16x16xf32>
    %cst_21 = arith.constant dense<0.000000e+00> : vector<16x32xf32>
    %49 = tpu.matmul %48, %34, %cst_21 {dimension_numbers = #tpu.dot_dimension_numbers<[1], [0], [0], [1], [0, 0, 1, 1], [], []>} : vector<16x16xf32>, vector<16x32xf32>, vector<16x32xf32> -> vector<16x32xf32>
    %c0_22 = arith.constant 0 : index
    %c32 = arith.constant 32 : index
    %50 = vector.load %arg13[%c0_22, %c32] : memref<16x128xf32, #tpu.memory_space<vmem>>, vector<16x32xf32>
    tpu.vector_store %arg13[%c0_22, %c32], %49 {strides = array<i32>} : memref<16x128xf32, #tpu.memory_space<vmem>>, vector<16x32xf32>,
    %51 = vector.extract_strided_slice %12 {offsets = [0, 64], sizes = [16, 32], strides = [1, 1]} : vector<16x384xf32> to vector<16x32xf32>
    %52 = vector.extract_strided_slice %12 {offsets = [0, 192], sizes = [16, 32], strides = [1, 1]} : vector<16x384xf32> to vector<16x32xf32>
    %53 = vector.extract_strided_slice %12 {offsets = [0, 320], sizes = [16, 32], strides = [1, 1]} : vector<16x384xf32> to vector<16x32xf32>
    %cst_23 = arith.constant dense<0.000000e+00> : vector<16x16xf32>
    %54 = tpu.matmul %51, %52, %cst_23 {dimension_numbers = #tpu.dot_dimension_numbers<[1], [1], [0], [0], [0, 0, 1, 0], [], []>} : vector<16x32xf32>, vector<16x32xf32>, vector<16x16xf32> -> vector<16x16xf32>
    %cst_24 = arith.constant 0.176776692 : f32
    %55 = vector.broadcast %cst_24 : f32 to vector<16x16xf32>
    %56 = arith.mulf %54, %55 : vector<16x16xf32>
    %57 = arith.addf %56, %4 : vector<16x16xf32>
    %cst_25 = arith.constant dense<0xFF800000> : vector<16xf32>
    %58 = vector.multi_reduction <maximumf>, %57, %cst_25 [1] : vector<16x16xf32> to vector<16xf32>
    %59 = vector.shape_cast %58 : vector<16xf32> to vector<16x1xf32>
    %60 = vector.broadcast %59 : vector<16x1xf32> to vector<16x16xf32>
    %61 = arith.subf %57, %60 : vector<16x16xf32>
    %62 = math.exp %61 : vector<16x16xf32>
    %cst_26 = arith.constant dense<0.000000e+00> : vector<16xf32>
    %63 = vector.multi_reduction <add>, %62, %cst_26 [1] : vector<16x16xf32> to vector<16xf32>
    %64 = vector.shape_cast %63 : vector<16xf32> to vector<16x1xf32>
    %65 = tpu.reciprocal %64 {approx = true} : vector<16x1xf32> -> vector<16x1xf32>
    %66 = vector.broadcast %65 : vector<16x1xf32> to vector<16x16xf32>
    %67 = arith.mulf %62, %66 : vector<16x16xf32>
    %cst_27 = arith.constant dense<0.000000e+00> : vector<16x32xf32>
    %68 = tpu.matmul %67, %53, %cst_27 {dimension_numbers = #tpu.dot_dimension_numbers<[1], [0], [0], [1], [0, 0, 1, 1], [], []>} : vector<16x16xf32>, vector<16x32xf32>, vector<16x32xf32> -> vector<16x32xf32>
    %c0_28 = arith.constant 0 : index
    %c64 = arith.constant 64 : index
    %69 = vector.load %arg13[%c0_28, %c64] : memref<16x128xf32, #tpu.memory_space<vmem>>, vector<16x32xf32>
    tpu.vector_store %arg13[%c0_28, %c64], %68 {strides = array<i32>} : memref<16x128xf32, #tpu.memory_space<vmem>>, vector<16x32xf32>,
    %70 = vector.extract_strided_slice %12 {offsets = [0, 96], sizes = [16, 32], strides = [1, 1]} : vector<16x384xf32> to vector<16x32xf32>
    %71 = vector.extract_strided_slice %12 {offsets = [0, 224], sizes = [16, 32], strides = [1, 1]} : vector<16x384xf32> to vector<16x32xf32>
    %72 = vector.extract_strided_slice %12 {offsets = [0, 352], sizes = [16, 32], strides = [1, 1]} : vector<16x384xf32> to vector<16x32xf32>
    %cst_29 = arith.constant dense<0.000000e+00> : vector<16x16xf32>
    %73 = tpu.matmul %70, %71, %cst_29 {dimension_numbers = #tpu.dot_dimension_numbers<[1], [1], [0], [0], [0, 0, 1, 0], [], []>} : vector<16x32xf32>, vector<16x32xf32>, vector<16x16xf32> -> vector<16x16xf32>
    %cst_30 = arith.constant 0.176776692 : f32
    %74 = vector.broadcast %cst_30 : f32 to vector<16x16xf32>
    %75 = arith.mulf %73, %74 : vector<16x16xf32>
    %76 = arith.addf %75, %4 : vector<16x16xf32>
    %cst_31 = arith.constant dense<0xFF800000> : vector<16xf32>
    %77 = vector.multi_reduction <maximumf>, %76, %cst_31 [1] : vector<16x16xf32> to vector<16xf32>
    %78 = vector.shape_cast %77 : vector<16xf32> to vector<16x1xf32>
    %79 = vector.broadcast %78 : vector<16x1xf32> to vector<16x16xf32>
    %80 = arith.subf %76, %79 : vector<16x16xf32>
    %81 = math.exp %80 : vector<16x16xf32>
    %cst_32 = arith.constant dense<0.000000e+00> : vector<16xf32>
    %82 = vector.multi_reduction <add>, %81, %cst_32 [1] : vector<16x16xf32> to vector<16xf32>
    %83 = vector.shape_cast %82 : vector<16xf32> to vector<16x1xf32>
    %84 = tpu.reciprocal %83 {approx = true} : vector<16x1xf32> -> vector<16x1xf32>
    %85 = vector.broadcast %84 : vector<16x1xf32> to vector<16x16xf32>
    %86 = arith.mulf %81, %85 : vector<16x16xf32>
    %cst_33 = arith.constant dense<0.000000e+00> : vector<16x32xf32>
    %87 = tpu.matmul %86, %72, %cst_33 {dimension_numbers = #tpu.dot_dimension_numbers<[1], [0], [0], [1], [0, 0, 1, 1], [], []>} : vector<16x16xf32>, vector<16x32xf32>, vector<16x32xf32> -> vector<16x32xf32>
    %c0_34 = arith.constant 0 : index
    %c96 = arith.constant 96 : index
    %88 = vector.load %arg13[%c0_34, %c96] : memref<16x128xf32, #tpu.memory_space<vmem>>, vector<16x32xf32>
    tpu.vector_store %arg13[%c0_34, %c96], %87 {strides = array<i32>} : memref<16x128xf32, #tpu.memory_space<vmem>>, vector<16x32xf32>,
    %c0_35 = arith.constant 0 : index
    %c0_36 = arith.constant 0 : index
    %89 = vector.load %arg13[%c0_35, %c0_36] : memref<16x128xf32, #tpu.memory_space<vmem>>, vector<16x128xf32>
    %90 = arith.truncf %89 : vector<16x128xf32> to vector<16x128xbf16>
    %c0_37 = arith.constant 0 : index
    %c0_38 = arith.constant 0 : index
    %c0_39 = arith.constant 0 : index
    %91 = vector.load %arg5[%c0_37, %c0_38, %c0_39] : memref<1x128x128xbf16, #tpu.memory_space<vmem>>, vector<1x128x128xbf16>
    %92 = vector.shape_cast %91 : vector<1x128x128xbf16> to vector<128x128xbf16>
    %cst_40 = arith.constant dense<0.000000e+00> : vector<16x128xf32>
    %93 = tpu.matmul %90, %92, %cst_40 {dimension_numbers = #tpu.dot_dimension_numbers<[1], [0], [0], [1], [0, 0, 1, 1], [], []>} : vector<16x128xbf16>, vector<128x128xbf16>, vector<16x128xf32> -> vector<16x128xf32>
    %c0_41 = arith.constant 0 : index
    %c2 = arith.constant 2 : index
    %c0_42 = arith.constant 0 : index
    %94 = vector.load %arg8[%c0_41, %c2, %c0_42] : memref<1x8x512xf32, #tpu.memory_space<vmem>>, vector<1x1x128xf32>
    %95 = vector.shape_cast %94 : vector<1x1x128xf32> to vector<1x128xf32>
    %96 = vector.broadcast %95 : vector<1x128xf32> to vector<16x128xf32>
    %97 = arith.addf %93, %96 : vector<16x128xf32>
    %98 = arith.addf %97, %3 : vector<16x128xf32>
    %c0_43 = arith.constant 0 : index
    %c4 = arith.constant 4 : index
    %c0_44 = arith.constant 0 : index
    %99 = vector.load %arg8[%c0_43, %c4, %c0_44] : memref<1x8x512xf32, #tpu.memory_space<vmem>>, vector<1x1x128xf32>
    %100 = vector.shape_cast %99 : vector<1x1x128xf32> to vector<1x128xf32>
    %c0_45 = arith.constant 0 : index
    %c5 = arith.constant 5 : index
    %c0_46 = arith.constant 0 : index
    %101 = vector.load %arg8[%c0_45, %c5, %c0_46] : memref<1x8x512xf32, #tpu.memory_space<vmem>>, vector<1x1x128xf32>
    %102 = vector.shape_cast %101 : vector<1x1x128xf32> to vector<1x128xf32>
    %cst_47 = arith.constant dense<0.000000e+00> : vector<16xf32>
    %103 = vector.multi_reduction <add>, %98, %cst_47 [1] : vector<16x128xf32> to vector<16xf32>
    %104 = vector.shape_cast %103 : vector<16xf32> to vector<16x1xf32>
    %cst_48 = arith.constant 1.280000e+02 : f32
    %105 = vector.broadcast %cst_48 : f32 to vector<16x1xf32>
    %106 = arith.divf %104, %105 : vector<16x1xf32>
    %107 = vector.broadcast %106 : vector<16x1xf32> to vector<16x128xf32>
    %108 = arith.subf %98, %107 : vector<16x128xf32>
    %109 = arith.mulf %108, %108 : vector<16x128xf32>
    %cst_49 = arith.constant dense<0.000000e+00> : vector<16xf32>
    %110 = vector.multi_reduction <add>, %109, %cst_49 [1] : vector<16x128xf32> to vector<16xf32>
    %111 = vector.shape_cast %110 : vector<16xf32> to vector<16x1xf32>
    %cst_50 = arith.constant 1.280000e+02 : f32
    %112 = vector.broadcast %cst_50 : f32 to vector<16x1xf32>
    %113 = arith.divf %111, %112 : vector<16x1xf32>
    %cst_51 = arith.constant 9.99999996E-13 : f32
    %114 = vector.broadcast %cst_51 : f32 to vector<16x1xf32>
    %115 = arith.addf %113, %114 : vector<16x1xf32>
    %116 = math.rsqrt %115 : vector<16x1xf32>
    %117 = vector.broadcast %116 : vector<16x1xf32> to vector<16x128xf32>
    %118 = arith.mulf %108, %117 : vector<16x128xf32>
    %119 = vector.broadcast %100 : vector<1x128xf32> to vector<16x128xf32>
    %120 = arith.mulf %118, %119 : vector<16x128xf32>
    %121 = vector.broadcast %102 : vector<1x128xf32> to vector<16x128xf32>
    %122 = arith.addf %120, %121 : vector<16x128xf32>
    %123 = arith.truncf %122 : vector<16x128xf32> to vector<16x128xbf16>
    %c0_52 = arith.constant 0 : index
    %c0_53 = arith.constant 0 : index
    %c0_54 = arith.constant 0 : index
    %124 = vector.load %arg6[%c0_52, %c0_53, %c0_54] : memref<1x128x512xbf16, #tpu.memory_space<vmem>>, vector<1x128x512xbf16>
    %125 = vector.shape_cast %124 : vector<1x128x512xbf16> to vector<128x512xbf16>
    %cst_55 = arith.constant dense<0.000000e+00> : vector<16x512xf32>
    %126 = tpu.matmul %123, %125, %cst_55 {dimension_numbers = #tpu.dot_dimension_numbers<[1], [0], [0], [1], [0, 0, 1, 1], [], []>} : vector<16x128xbf16>, vector<128x512xbf16>, vector<16x512xf32> -> vector<16x512xf32>
    %c0_56 = arith.constant 0 : index
    %c1 = arith.constant 1 : index
    %c0_57 = arith.constant 0 : index
    %127 = vector.load %arg8[%c0_56, %c1, %c0_57] : memref<1x8x512xf32, #tpu.memory_space<vmem>>, vector<1x1x512xf32>
    %128 = vector.shape_cast %127 : vector<1x1x512xf32> to vector<1x512xf32>
    %129 = vector.broadcast %128 : vector<1x512xf32> to vector<16x512xf32>
    %130 = arith.addf %126, %129 : vector<16x512xf32>
    %cst_58 = arith.constant 5.000000e-01 : f32
    %131 = vector.broadcast %cst_58 : f32 to vector<16x512xf32>
    %132 = arith.mulf %131, %130 : vector<16x512xf32>
    %cst_59 = arith.constant 4.471500e-02 : f32
    %133 = vector.broadcast %cst_59 : f32 to vector<16x512xf32>
    %134 = arith.mulf %133, %130 : vector<16x512xf32>
    %135 = arith.mulf %134, %130 : vector<16x512xf32>
    %136 = arith.mulf %135, %130 : vector<16x512xf32>
    %137 = arith.addf %130, %136 : vector<16x512xf32>
    %cst_60 = arith.constant 0.797884583 : f32
    %138 = vector.broadcast %cst_60 : f32 to vector<16x512xf32>
    %139 = arith.mulf %138, %137 : vector<16x512xf32>
    %140 = math.tanh %139 : vector<16x512xf32>
    %cst_61 = arith.constant 1.000000e+00 : f32
    %141 = vector.broadcast %cst_61 : f32 to vector<16x512xf32>
    %142 = arith.addf %141, %140 : vector<16x512xf32>
    %143 = arith.mulf %132, %142 : vector<16x512xf32>
    %144 = arith.truncf %143 : vector<16x512xf32> to vector<16x512xbf16>
    %c0_62 = arith.constant 0 : index
    %c0_63 = arith.constant 0 : index
    %c0_64 = arith.constant 0 : index
    %145 = vector.load %arg7[%c0_62, %c0_63, %c0_64] : memref<1x512x128xbf16, #tpu.memory_space<vmem>>, vector<1x512x128xbf16>
    %146 = vector.shape_cast %145 : vector<1x512x128xbf16> to vector<512x128xbf16>
    %cst_65 = arith.constant dense<0.000000e+00> : vector<16x128xf32>
    %147 = tpu.matmul %144, %146, %cst_65 {dimension_numbers = #tpu.dot_dimension_numbers<[1], [0], [0], [1], [0, 0, 1, 1], [], []>} : vector<16x512xbf16>, vector<512x128xbf16>, vector<16x128xf32> -> vector<16x128xf32>
    %c0_66 = arith.constant 0 : index
    %c3 = arith.constant 3 : index
    %c0_67 = arith.constant 0 : index
    %148 = vector.load %arg8[%c0_66, %c3, %c0_67] : memref<1x8x512xf32, #tpu.memory_space<vmem>>, vector<1x1x128xf32>
    %149 = vector.shape_cast %148 : vector<1x1x128xf32> to vector<1x128xf32>
    %150 = vector.broadcast %149 : vector<1x128xf32> to vector<16x128xf32>
    %151 = arith.addf %147, %150 : vector<16x128xf32>
    %152 = arith.addf %151, %122 : vector<16x128xf32>
    %c0_68 = arith.constant 0 : index
    %c6 = arith.constant 6 : index
    %c0_69 = arith.constant 0 : index
    %153 = vector.load %arg8[%c0_68, %c6, %c0_69] : memref<1x8x512xf32, #tpu.memory_space<vmem>>, vector<1x1x128xf32>
    %154 = vector.shape_cast %153 : vector<1x1x128xf32> to vector<1x128xf32>
    %c0_70 = arith.constant 0 : index
    %c7 = arith.constant 7 : index
    %c0_71 = arith.constant 0 : index
    %155 = vector.load %arg8[%c0_70, %c7, %c0_71] : memref<1x8x512xf32, #tpu.memory_space<vmem>>, vector<1x1x128xf32>
    %156 = vector.shape_cast %155 : vector<1x1x128xf32> to vector<1x128xf32>
    %cst_72 = arith.constant dense<0.000000e+00> : vector<16xf32>
    %157 = vector.multi_reduction <add>, %152, %cst_72 [1] : vector<16x128xf32> to vector<16xf32>
    %158 = vector.shape_cast %157 : vector<16xf32> to vector<16x1xf32>
    %cst_73 = arith.constant 1.280000e+02 : f32
    %159 = vector.broadcast %cst_73 : f32 to vector<16x1xf32>
    %160 = arith.divf %158, %159 : vector<16x1xf32>
    %161 = vector.broadcast %160 : vector<16x1xf32> to vector<16x128xf32>
    %162 = arith.subf %152, %161 : vector<16x128xf32>
    %163 = arith.mulf %162, %162 : vector<16x128xf32>
    %cst_74 = arith.constant dense<0.000000e+00> : vector<16xf32>
    %164 = vector.multi_reduction <add>, %163, %cst_74 [1] : vector<16x128xf32> to vector<16xf32>
    %165 = vector.shape_cast %164 : vector<16xf32> to vector<16x1xf32>
    %cst_75 = arith.constant 1.280000e+02 : f32
    %166 = vector.broadcast %cst_75 : f32 to vector<16x1xf32>
    %167 = arith.divf %165, %166 : vector<16x1xf32>
    %cst_76 = arith.constant 9.99999996E-13 : f32
    %168 = vector.broadcast %cst_76 : f32 to vector<16x1xf32>
    %169 = arith.addf %167, %168 : vector<16x1xf32>
    %170 = math.rsqrt %169 : vector<16x1xf32>
    %171 = vector.broadcast %170 : vector<16x1xf32> to vector<16x128xf32>
    %172 = arith.mulf %162, %171 : vector<16x128xf32>
    %173 = vector.broadcast %154 : vector<1x128xf32> to vector<16x128xf32>
    %174 = arith.mulf %172, %173 : vector<16x128xf32>
    %175 = vector.broadcast %156 : vector<1x128xf32> to vector<16x128xf32>
    %176 = arith.addf %174, %175 : vector<16x128xf32>
    %c0_77 = arith.constant 0 : index
    %c0_78 = arith.constant 0 : index
    %177 = vector.load %arg12[%c0_77, %c0_78] : memref<16x128xf32, #tpu.memory_space<vmem>>, vector<16x128xf32>
    tpu.vector_store %arg12[%c0_77, %c0_78], %176 {strides = array<i32>} : memref<16x128xf32, #tpu.memory_space<vmem>>, vector<16x128xf32>,
    %c1_i32 = arith.constant 1 : i32
    %178 = arith.cmpi eq, %arg0, %c1_i32 : i32
    %179 = arith.extui %178 : i1 to i32
    %c0_i32_79 = arith.constant 0 : i32
    %180 = arith.cmpi ne, %179, %c0_i32_79 : i32
    scf.if %180 {
      %c0_80 = arith.constant 0 : index
      %c0_81 = arith.constant 0 : index
      %181 = tpu.strided_load %arg12[%c0_80, %c0_81] {strides = array<i32: 8, 1>} : memref<16x128xf32, #tpu.memory_space<vmem>>, vector<2x128xf32>
      %182 = arith.truncf %181 : vector<2x128xf32> to vector<2x128xbf16>
      %c0_82 = arith.constant 0 : index
      %c0_83 = arith.constant 0 : index
      %183 = vector.load %arg9[%c0_82, %c0_83] : memref<128x256xbf16, #tpu.memory_space<vmem>>, vector<128x128xbf16>
      %cst_84 = arith.constant dense<0.000000e+00> : vector<2x128xf32>
      %184 = tpu.matmul %182, %183, %cst_84 {dimension_numbers = #tpu.dot_dimension_numbers<[1], [0], [0], [1], [0, 0, 1, 1], [], []>} : vector<2x128xbf16>, vector<128x128xbf16>, vector<2x128xf32> -> vector<2x128xf32>
      %c0_85 = arith.constant 0 : index
      %c0_86 = arith.constant 0 : index
      %185 = vector.load %arg10[%c0_85, %c0_86] : memref<1x256xf32, #tpu.memory_space<vmem>>, vector<1x128xf32>
      %186 = vector.broadcast %185 : vector<1x128xf32> to vector<2x128xf32>
      %187 = arith.addf %184, %186 : vector<2x128xf32>
      %188 = math.tanh %187 : vector<2x128xf32>
      %189 = arith.truncf %188 : vector<2x128xf32> to vector<2x128xbf16>
      %c0_87 = arith.constant 0 : index
      %c128 = arith.constant 128 : index
      %190 = vector.load %arg9[%c0_87, %c128] : memref<128x256xbf16, #tpu.memory_space<vmem>>, vector<128x128xbf16>
      %cst_88 = arith.constant dense<0.000000e+00> : vector<2x128xf32>
      %191 = tpu.matmul %189, %190, %cst_88 {dimension_numbers = #tpu.dot_dimension_numbers<[1], [0], [0], [1], [0, 0, 1, 1], [], []>} : vector<2x128xbf16>, vector<128x128xbf16>, vector<2x128xf32> -> vector<2x128xf32>
      %c0_89 = arith.constant 0 : index
      %c128_90 = arith.constant 128 : index
      %192 = vector.load %arg10[%c0_89, %c128_90] : memref<1x256xf32, #tpu.memory_space<vmem>>, vector<1x128xf32>
      %193 = vector.broadcast %192 : vector<1x128xf32> to vector<2x128xf32>
      %194 = arith.addf %191, %193 : vector<2x128xf32>
      %c0_91 = arith.constant 0 : index
      %c0_92 = arith.constant 0 : index
      %195 = vector.load %arg11[%c0_91, %c0_92] : memref<2x128xf32, #tpu.memory_space<vmem>>, vector<2x128xf32>
      tpu.vector_store %arg11[%c0_91, %c0_92], %194 {strides = array<i32>} : memref<2x128xf32, #tpu.memory_space<vmem>>, vector<2x128xf32>,
    } else {
    }
    return
  }
  func.func @transform_0(%arg0: i32) -> (i32, i32) {
    %c0_i32 = arith.constant 0 : i32
    %c0_i32_0 = arith.constant 0 : i32
    %c0_i32_1 = arith.constant 0 : i32
    return %c0_i32, %c0_i32_0 : i32, i32
  }
  func.func @transform_1(%arg0: i32) -> (i32, i32) {
    %c0_i32 = arith.constant 0 : i32
    %c0_i32_0 = arith.constant 0 : i32
    %c0_i32_1 = arith.constant 0 : i32
    return %c0_i32, %c0_i32_0 : i32, i32
  }
  func.func @transform_2(%arg0: i32) -> (i32, i32) {
    %c0_i32 = arith.constant 0 : i32
    %c0_i32_0 = arith.constant 0 : i32
    %c0_i32_1 = arith.constant 0 : i32
    return %c0_i32, %c0_i32_0 : i32, i32
  }
  func.func @transform_3(%arg0: i32) -> (i32, i32, i32) {
    %c0_i32 = arith.constant 0 : i32
    %c0_i32_0 = arith.constant 0 : i32
    %c0_i32_1 = arith.constant 0 : i32
    return %arg0, %c0_i32, %c0_i32_0 : i32, i32, i32
  }
  func.func @transform_4(%arg0: i32) -> (i32, i32, i32) {
    %c0_i32 = arith.constant 0 : i32
    %c0_i32_0 = arith.constant 0 : i32
    %c0_i32_1 = arith.constant 0 : i32
    return %arg0, %c0_i32, %c0_i32_0 : i32, i32, i32
  }
  func.func @transform_5(%arg0: i32) -> (i32, i32, i32) {
    %c0_i32 = arith.constant 0 : i32
    %c0_i32_0 = arith.constant 0 : i32
    %c0_i32_1 = arith.constant 0 : i32
    return %arg0, %c0_i32, %c0_i32_0 : i32, i32, i32
  }
  func.func @transform_6(%arg0: i32) -> (i32, i32, i32) {
    %c0_i32 = arith.constant 0 : i32
    %c0_i32_0 = arith.constant 0 : i32
    %c0_i32_1 = arith.constant 0 : i32
    return %arg0, %c0_i32, %c0_i32_0 : i32, i32, i32
  }
  func.func @transform_7(%arg0: i32) -> (i32, i32, i32) {
    %c0_i32 = arith.constant 0 : i32
    %c0_i32_0 = arith.constant 0 : i32
    %c0_i32_1 = arith.constant 0 : i32
    return %arg0, %c0_i32, %c0_i32_0 : i32, i32, i32
  }
  func.func @transform_8(%arg0: i32) -> (i32, i32) {
    %c0_i32 = arith.constant 0 : i32
    %c0_i32_0 = arith.constant 0 : i32
    %c0_i32_1 = arith.constant 0 : i32
    return %c0_i32, %c0_i32_0 : i32, i32
  }
  func.func @transform_9(%arg0: i32) -> (i32, i32) {
    %c0_i32 = arith.constant 0 : i32
    %c0_i32_0 = arith.constant 0 : i32
    %c0_i32_1 = arith.constant 0 : i32
    return %c0_i32, %c0_i32_0 : i32, i32
  }
  func.func @transform_10(%arg0: i32) -> (i32, i32) {
    %c0_i32 = arith.constant 0 : i32
    %c0_i32_0 = arith.constant 0 : i32
    %c0_i32_1 = arith.constant 0 : i32
    return %c0_i32, %c0_i32_0 : i32, i32
  }
}

</mosaic_0001>

<bundles_post_ra>
// kernel: bert_class_forward.1
= control target key start
LH: loop header
LB: loop body
LE: loop exit
PB: predicated region body
PF: predicated region fallthrough
CT: control target
= control target key end

     0   :  { %s4518_s0 = inlined_call_operand.vmem [shape: f32[16,128], index: 0, kind: input, shape index: {}]   ;;  %s4519_s1 = inlined_call_operand.vmem [shape: f32[16,16], index: 1, kind: input, shape index: {}]   ;;  %s4520_s2 = inlined_call_operand.vmem [shape: f32[2,128], index: 2, kind: input, shape index: {}]   ;;  %s4521_s3 = inlined_call_operand.hbm [shape: bf16[2,128,384], index: 3, kind: input, shape index: {}]   ;;  %s4522_s4 = inlined_call_operand.vmem [shape: bf16[2,128,128], index: 4, kind: input, shape index: {}]   ;;  %s4523_s5 = inlined_call_operand.hbm [shape: bf16[2,128,512], index: 5, kind: input, shape index: {}]   ;;  %s4524_s6 = inlined_call_operand.hbm [shape: bf16[2,512,128], index: 6, kind: input, shape index: {}]   ;;  %s4525_s7 = inlined_call_operand.vmem [shape: f32[2,8,512], index: 7, kind: input, shape index: {}]   ;;  %s4526_s8 = inlined_call_operand.vmem [shape: bf16[128,256], index: 8, kind: input, shape index: {}]   ;;  %s4527_s9 = inlined_call_operand.vmem [shape: f32[1,256], index: 9, kind: input, shape index: {}]   ;;  %s4528_s10 = inlined_call_operand.hbm [shape: f32[2,128], index: 10, kind: output, shape index: {}]  }
   0x1   :  { %4535 = sst [smem:[#allocation17_spill]] %s4523_s5 }
   0x2   :  { %15 = vsyncpa [#allocation5], 0 }
   0x3   :  { %17 = vsyncpa [#allocation5 + $0x1], 0 }
   0x4   :  { %18 = vsyncpa [#allocation8], 0 }
   0x5   :  { %20 = vsyncpa [#allocation8 + $0x1], 0 }
   0x6   :  { %21 = vsyncpa [#allocation6], 0  ;;  %s3874_s13 = smov 0   ;;  %s3876_s14 = smov 0  }
   0x7   :  { %s3878_s15 = smov 0   ;;  %s3880_s16 = smov 0  }
   0x8 LB: > { %4536 = sst [smem:[#allocation14_spill]] %s3795_s15  ;;  %s3893_s17 = sadd.s32 4294967295, %s3799_s16   ;;  %s3799_s16 = sphi %s3880_s16, %s4550_s16   ;;  %s3795_s15 = sphi %s3878_s15, %s4552_s15   ;;  %s3791_s14 = sphi %s3876_s14, %s4554_s14   ;;  %s3787_s13 = sphi %s3874_s13, %s4553_s13  }
   0x9   : > { %s3896_s18 = sadd.s32 1, %s3799_s16   ;;  %s97_s20 = sadd.s32 1, %s3795_s15 }
   0xa   : > { %4537 = sst [smem:[#allocation15_spill]] %s3896_s18  ;;  %s94_s19 = ssub.s32 %s3799_s16, %s3896_s18 }
   0xb   : > { %p95_p0 = scmp.eq.s32.totalorder %s94_s19, 0  ;;  %p104_p1 = scmp.ne.s32.totalorder %s3795_s15, %s3791_s14 }
   0xc   : > { %p105_p2 = scmp.eq.s32.totalorder %s3799_s16, 0  ;;  %p110_p3 = scmp.ne.s32.totalorder %s3791_s14, %s3787_s13 }
   0xd   : > { %s3906_s21 = scalar_select %p95_p0, %s3795_s15, %s97_s20  }
   0xe   : > { %p106_p4 = por %p105_p2, %p104_p1  ;;  %p111_p5 = scmp.eq.s32.totalorder %s3893_s17, 0 }
   0xf   : > { %4538 = sst [smem:[#allocation16_spill]] %s3906_s21  ;;  %p3363_p6 = scmp.lt.s32.totalorder %s3799_s16, 2 }
  0x10   : > { %p3910_p7 = por %p111_p5, %p110_p3  ;;  %s3915_s23 = sand.u32 1, %s3795_s15  }
  0x11   : > { %p3917_p8 = pnand %p3363_p6, %p106_p4  ;;  %s345_s25 = sand.u32 1, %s3799_s16  }
  0x12   : > { %s4539_s22 = scalar_select %p3910_p7, 1, 0 }
  0x13   : > { %s4529_s26 = sshll.u32 %s3915_s23, 8  ;;  %s4530_s27 = sshll.u32 %s3799_s16, 12 }
  0x14   : > { %s349_s28 = scalar_lea.vmem [#allocation7], %s4529_s26  ;;  %s4541_s5 = sld [smem:[#allocation17_spill]] }
  0x15   : > { %s356_s29 = sshll.u32 %s349_s28, 4  ;;  %s3935_s13 = scalar_lea.sflag [#allocation8], %s345_s25  ;;  %s3933_s29 = int_to_ptr.vmem [resolvable:$true] %s356_s29 }
  0x16   : > { %p3941_p10 = pneg %p3917_p8 }
  0x1a   : > { %s3931_s12 = scalar_lea.hbm %s4541_s5, %s4530_s27  ;;  %s3646_s11 = scalar_lea.hbm %s4541_s5, 8192 }
  0x1b   : > { %s3641_s19 = scalar_lea.hbm %s3931_s12, 4096  ;;  %p3647_p13 = scmp.lt.u32.totalorder %s3931_s12, %s4541_s5 }
  0x1c   : > { %p3642_p9 = scmp.ne.s32.totalorder %s3931_s12, %s3641_s19  ;;  %p3648_p0 = scmp.lt.u32.totalorder %s3646_s11, %s3641_s19 }
  0x1d   : > { %p3650_p2 = scmp.lt.u32.totalorder %s3641_s19, %s3931_s12 }
  0x1e   : > { %p3644_p11 = pnand %p3941_p10, %p3642_p9  ;;  %p3649_p1 = por %p3648_p0, %p3647_p13 }
  0x20   : > { %p3645_p12 = pneg %p3644_p11  ;;  %p3651_p3 = por %p3650_p2, %p3649_p1 }
  0x22   : > { %p3652_p4 = pnand %p3651_p3, %p3645_p12 }
  0x24   : > { %3655 = shalt.err (!%p3652_p4)
}
  0x25   : > { %s3656_s25 = scalar_lea.vmem %s3933_s29, 4096  ;;  %s3801_s28 = smov [#allocation7]  }
  0x26   : > { %p3657_p5 = scmp.ne.s32.totalorder %s3933_s29, %s3656_s25  ;;  %s3661_s30 = sshll.u32 %s3801_s28, 4  ;;  %s3662_s30 = int_to_ptr.vmem [resolvable:$false] %s3661_s30 }
  0x27   : > { %s3663_s26 = scalar_lea.vmem %s3662_s30, 8192  ;;  %p3664_p11 = scmp.lt.s32.totalorder %s3933_s29, %s3662_s30 }
  0x28   : > { %p3659_p6 = pnand %p3657_p5, %p3941_p10  ;;  %p3665_p7 = scmp.lt.s32.totalorder %s3663_s26, %s3656_s25 }
  0x2a   : > { %p3660_p9 = pneg %p3659_p6  ;;  %p3666_p13 = por %p3665_p7, %p3664_p11 }
  0x2c   : > { %p3667_p0 = pnand %p3666_p13, %p3660_p9 }
  0x2e   : > { %3670 = shalt.err (!%p3667_p0)
}
  0x2f   : > { %s3802_s27 = smov 256   ;;  %s3803_s19 = smov 16  }
  0x30   : > { %3359 = dma.hbm_to_vmem [thread:$0]  (!%p3917_p8), %s3931_s12, 4096, %s3933_s29, %s3935_s13, %s3802_s27, %s3802_s27, %s3803_s19  }
  0x31   : > { %s4543_s11 = sshll.u32 %s3799_s16, 12  ;;  %s4544_s26 = sshll.u32 %s3915_s23, 8 }
  0x32   : > { %s3970_s30 = scalar_lea.hbm %s4524_s6, %s4543_s11  ;;  %s370_s5 = scalar_lea.vmem [#allocation9], %s4544_s26 }
  0x33   : > { %s377_s21 = sshll.u32 %s370_s5, 4  ;;  %p2894_p7 = scmp.ge.s32.totalorder %s3799_s16, 1  ;;  %s3975_s21 = int_to_ptr.vmem [resolvable:$true] %s377_s21 }
  0x34   : > { %p393_p12 = scmp.lt.s32.totalorder %s3799_s16, 3  ;;  %s3340_s15 = smul.u32 192, %s3915_s23 }
  0x35   : > { %s3341_s29 = smul.u32 3072, %s3799_s16  ;;  %s317_s25 = scalar_lea.sflag [#allocation5], %s3915_s23 }
  0x36   : > { %p3979_p1 = pnand %p2894_p7, %p393_p12  ;;  %s320_s5 = scalar_lea.vmem [#allocation4], %s3340_s15 }
  0x37   : > { %s3987_s19 = scalar_lea.hbm %s4521_s3, %s3341_s29  ;;  %s327_s11 = sshll.u32 %s320_s5, 4  ;;  %s3989_s11 = int_to_ptr.vmem [resolvable:$true] %s327_s11 }
  0x38   : > { %s4545_s18 = scalar_select %p3979_p1, 1, 0 }
  0x39   : > { %s3671_s28 = scalar_lea.hbm %s3987_s19, 3072  ;;  %s3676_s12 = scalar_lea.hbm %s4521_s3, 6144 }
  0x3a   : > { %p3672_p2 = scmp.ne.s32.totalorder %s3987_s19, %s3671_s28  ;;  %p3677_p5 = scmp.lt.u32.totalorder %s3987_s19, %s4521_s3 }
  0x3b   : > { %p3678_p6 = scmp.lt.u32.totalorder %s3676_s12, %s3671_s28  ;;  %p3680_p11 = scmp.lt.u32.totalorder %s3671_s28, %s3987_s19 }
  0x3c   : > { %p3674_p3 = pnand %p3672_p2, %p3941_p10 }
  0x3d   : > { %p3679_p9 = por %p3678_p6, %p3677_p5 }
  0x3e   : > { %p3675_p4 = pneg %p3674_p3 }
  0x3f   : > { %p3681_p13 = por %p3680_p11, %p3679_p9 }
  0x41   : > { %p3682_p0 = pnand %p3681_p13, %p3675_p4 }
  0x43   : > { %3685 = shalt.err (!%p3682_p0)
}
  0x44   : > { %s3686_s15 = scalar_lea.vmem %s3989_s11, 3072  ;;  %s3804_s5 = smov [#allocation4]  }
  0x45   : > { %p3687_p7 = scmp.ne.s32.totalorder %s3989_s11, %s3686_s15  ;;  %s3691_s16 = sshll.u32 %s3804_s5, 4  ;;  %s3692_s16 = int_to_ptr.vmem [resolvable:$false] %s3691_s16 }
  0x46   : > { %s3693_s26 = scalar_lea.vmem %s3692_s16, 6144  ;;  %p3694_p3 = scmp.lt.s32.totalorder %s3989_s11, %s3692_s16 }
  0x47   : > { %p3689_p12 = pnand %p3687_p7, %p3941_p10  ;;  %p3695_p1 = scmp.lt.s32.totalorder %s3693_s26, %s3686_s15 }
  0x49   : > { %p3690_p2 = pneg %p3689_p12  ;;  %p3696_p5 = por %p3695_p1, %p3694_p3 }
  0x4b   : > { %p3697_p6 = pnand %p3696_p5, %p3690_p2 }
  0x4d   : > { %3700 = shalt.err (!%p3697_p6)
}
  0x4e   : > { %s3805_s28 = smov 192   ;;  %s3806_s12 = smov 12  }
  0x4f   : > { %3356 = dma.hbm_to_vmem [thread:$0]  (!%p3917_p8), %s3987_s19, 3072, %s3989_s11, %s317_s25, %s3805_s28, %s3805_s28, %s3806_s12  }
  0x50   : > { %s3701_s29 = scalar_lea.hbm %s3970_s30, 4096  ;;  %s3706_s5 = scalar_lea.hbm %s4524_s6, 8192 }
  0x51   : > { %p3702_p4 = scmp.ne.s32.totalorder %s3970_s30, %s3701_s29  ;;  %p3707_p11 = scmp.lt.u32.totalorder %s3970_s30, %s4524_s6 }
  0x52   : > { %p3708_p13 = scmp.lt.u32.totalorder %s3706_s5, %s3701_s29  ;;  %p3710_p7 = scmp.lt.u32.totalorder %s3701_s29, %s3970_s30 }
  0x53   : > { %p3704_p1 = pnand %p3702_p4, %p3941_p10 }
  0x54   : > { %p3709_p0 = por %p3708_p13, %p3707_p11 }
  0x55   : > { %p3705_p9 = pneg %p3704_p1 }
  0x56   : > { %p3711_p12 = por %p3710_p7, %p3709_p0 }
  0x58   : > { %p3712_p2 = pnand %p3711_p12, %p3705_p9 }
  0x5a   : > { %3715 = shalt.err (!%p3712_p2)
}
  0x5b   : > { %s3716_s23 = scalar_lea.vmem %s3975_s21, 4096  ;;  %s3807_s19 = smov [#allocation9]  }
  0x5c   : > { %p3717_p3 = scmp.ne.s32.totalorder %s3975_s21, %s3716_s23  ;;  %s3721_s11 = sshll.u32 %s3807_s19, 4  ;;  %s3722_s11 = int_to_ptr.vmem [resolvable:$false] %s3721_s11 }
  0x5d   : > { %s3723_s25 = scalar_lea.vmem %s3722_s11, 8192  ;;  %p3724_p4 = scmp.lt.s32.totalorder %s3975_s21, %s3722_s11 }
  0x5e   : > { %p3719_p5 = pnand %p3717_p3, %p3941_p10  ;;  %p3725_p1 = scmp.lt.s32.totalorder %s3723_s25, %s3716_s23 }
  0x60   : > { %p3720_p6 = pneg %p3719_p5  ;;  %p3726_p11 = por %p3725_p1, %p3724_p4 }
  0x62   : > { %p3727_p13 = pnand %p3726_p11, %p3720_p6 }
  0x64   : > { %3730 = shalt.err (!%p3727_p13)
}
  0x65   : > { %s3808_s28 = smov 64   ;;  %s3809_s12 = smov 4  }
  0x66   : > { %3362 = dma.hbm_to_vmem [thread:$0]  (!%p3917_p8), %s3970_s30, 4096, %s3975_s21, %s3935_s13, %s3808_s28, %s3808_s28, %s3809_s12  }
  0x67   : > { %p4546_p10 = scmp.ne.s32.totalorder %s4545_s18, 0 }
  0x68   : > { %s399_s20 = sand.u32 (!%p4546_p10), 1, %s3791_s14   ;;  %p4547_p9 = scmp.ne.s32.totalorder (!%p4546_p10), %s4539_s22, 0 }
  0x69   : > { %397 = sbr.rel (%p4546_p10) target bundleno = 4469 (0x1175), region = 60  ;;  %s400_s27 = scalar_lea.sflag (!%p4546_p10), [#allocation5], %s399_s20 }
  0x6a   : > { %s3342_s29 = smul.u32 (!%p4546_p10), 192, %s399_s20 }
  0x6c   : > { %s4040_s15 = scalar_lea.vmem (!%p4546_p10), [#allocation4], %s3342_s29 }
  0x70   : > { %3774 = dma.done.wait (%p4547_p9), %s400_s27, 3072  }
  0x71   : > { %3776 = vsyncadd (%p4547_p9), %s400_s27, 4294964224  ;;  %s408_s5 = sand.u32 1, %s3893_s17   ;;  %s2895_s24 = sshll.u32 %s399_s20, 8 }
  0x72   : > { %s409_s21 = scalar_lea.sflag [#allocation8], %s408_s5  ;;  %s4047_s13 = scalar_lea.vmem [#allocation7], %s2895_s24 }
  0x73   : > { %3778 = dma.done.wait (%p4547_p9), %s409_s21, 8192  }
  0x74   : > { %3780 = vsyncadd (%p4547_p9), %s409_s21, 4294959104  ;;  %p473_p8 = scmp.lt.s32.totalorder %s3893_s17, 1  ;;  %s4065_s12 = scalar_lea.vmem [#allocation9], %s2895_s24 }
  0x75   : > { %p2901_p0 = scmp.ne.s32.totalorder %s3893_s17, 0 }
  0x76   : > { %s474_s18 = scalar_select %p473_p8, %s3893_s17, 1 }
  0x77   : > { %487 = sbr.rel (%p2901_p0) target bundleno = 436 (0x1b4), region = 76  ;;  %v488_v0 = vld [vmem:[%s4518_s0] sm:$0xff] (!%p2901_p0)  ;;  %v489_v1 = vld [vmem:[%s4518_s0 + $0x8] sm:$0xff] (!%p2901_p0) }
  0x78   : > { %s3050_s30 = sshll.u32 %s474_s18, 6  ;;  %s3051_s16 = sshll.u32 %s474_s18, 5  ;;  %492 = vadd.xlane.f32.xlu0 (!%p2901_p0), %v488_v0  ;;  %v2902_v17 = vld [vmem:[%s4520_s2] ss:$0 sm:$0xff] (!%p2901_p0)  ;;  %v2903_v19 = vld [vmem:[%s4520_s2 + $0x1] ss:$0 sm:$0xff] (!%p2901_p0) }
  0x79   : > { %s4058_s19 = scalar_lea.vmem %s4522_s4, %s3050_s30  ;;  %s4063_s28 = scalar_lea.vmem %s4525_s7, %s3051_s16 }
  0x7c   : > { %494 = vadd.xlane.f32.xlu0 (!%p2901_p0), %v489_v1 }
 0x105   : > { %v493_v2 = vpop.xlane.xlu0 %492 }
 0x106   : > { %v497_v3 = vmul.f32 0.0078125, %v493_v2 }
 0x108   : > { %v499_v4 = vsub.f32 %v488_v0, %v497_v3 }
 0x109   : > { %v495_v5 = vpop.xlane.xlu0 %494 }
 0x10a   : > { %v498_v6 = vmul.f32 0.0078125, %v495_v5  ;;  %v501_v7 = vmul.f32 %v499_v4, %v499_v4 }
 0x10c   : > { %v500_v8 = vsub.f32 %v489_v1, %v498_v6  ;;  %503 = vadd.xlane.f32.xlu1 %v501_v7 }
 0x10e   : > { %v502_v9 = vmul.f32 %v500_v8, %v500_v8 }
 0x110   : > { %505 = vadd.xlane.f32.xlu1 %v502_v9 }
 0x199   : > { %v504_v10 = vpop.xlane.xlu1 %503 }
 0x19a   : > { %v507_v11 = vmul.f32 0.0078125, %v504_v10 }
 0x19c   : > { %v509_v12 = vadd.f32 1e-12, %v507_v11 }
 0x19d   : > { %v506_v13 = vpop.xlane.xlu1 %505 }
 0x19e   : > { %3413 = vrsqrt.f32 %v509_v12  ;;  %v508_v14 = vmul.f32 0.0078125, %v506_v13 }
 0x1a0   : > { %v510_v15 = vadd.f32 1e-12, %v508_v14 }
 0x1a2   : > { %3415 = vrsqrt.f32 %v510_v15 }
 0x1a8   : > { %v3414_v16 = vpop.eup %3413 }
 0x1a9   : > { %v513_v18 = vmul.f32 %v3414_v16, %v499_v4 }
 0x1ab   : > { %v519_v20 = vmul.f32 %v2902_v17, %v513_v18 }
 0x1ac   : > { %v3416_v21 = vpop.eup %3415 }
 0x1ad   : > { %v525_v22 = vadd.f32 %v2903_v19, %v519_v20  ;;  %v514_v23 = vmul.f32 %v3416_v21, %v500_v8 }
 0x1af   : > { %527 = vst [vmem:[#allocation2] sm:$0xff] %v525_v22  ;;  %v520_v24 = vmul.f32 %v2902_v17, %v514_v23 }
 0x1b1   : > { %v526_v25 = vadd.f32 %v2903_v19, %v520_v24 }
 0x1b3   : > { %528 = vst [vmem:[#allocation2 + $0x8] sm:$0xff] %v526_v25 }
 0x1b4 PF: > { %v3447_v26 = vld [vmem:[%s4040_s15 + $0x4] ss:$12 sps:$4 sm:$0xff]   ;;  %v3449_v27 = vld [vmem:[%s4040_s15] ss:$12 sps:$4 sm:$0xff]   ;;  %v3810_v28 = vmov 0   ;;  %v568_v46 = vlaneseq  ;;  %v3811_v53 = vmov 0.0  }
 0x1b5   : > { %743 = vmatprep.mubr.bf16.mxu0 %v3810_v28  ;;  %711 = vmatprep.subr.bf16.mxu0 %v3447_v26  ;;  %v3450_v29 = vld [vmem:[%s4040_s15 + $0x1c] ss:$12 sps:$4 sm:$0xff]   ;;  %v3452_v30 = vld [vmem:[%s4040_s15 + $0x18] ss:$12 sps:$4 sm:$0xff]   ;;  %v3453_v31 = vld [vmem:[%s4040_s15 + $0x34] ss:$12 sps:$4 sm:$0xff]  }
 0x1b6   : > { %712 = vmatpush1.bf16.msra.mxu0 %v3449_v27  ;;  %v3455_v32 = vld [vmem:[%s4040_s15 + $0x30] ss:$12 sps:$4 sm:$0xff]   ;;  %v3456_v33 = vld [vmem:[%s4040_s15 + $0x4c] ss:$12 sps:$4 sm:$0xff]   ;;  %v3458_v34 = vld [vmem:[%s4040_s15 + $0x48] ss:$12 sps:$4 sm:$0xff]   ;;  %3164 = vmatprep.subr.bf16.mxu1 %v3811_v53 }
 0x1b7   : > { %713 = vmatprep.subr.bf16.mxu0 %v3450_v29  ;;  %v3459_v35 = vld [vmem:[%s4040_s15 + $0x64] ss:$12 sps:$4 sm:$0xff]   ;;  %v3461_v36 = vld [vmem:[%s4040_s15 + $0x60] ss:$12 sps:$4 sm:$0xff]   ;;  %v3462_v37 = vld [vmem:[%s4040_s15 + $0x7c] ss:$12 sps:$4 sm:$0xff]  }
 0x1b8   : > { %v3464_v38 = vld [vmem:[%s4040_s15 + $0x78] ss:$12 sps:$4 sm:$0xff]   ;;  %v3465_v39 = vld [vmem:[%s4040_s15 + $0x94] ss:$12 sps:$4 sm:$0xff]   ;;  %v3467_v40 = vld [vmem:[%s4040_s15 + $0x90] ss:$12 sps:$4 sm:$0xff]  }
 0x1b9   : > { %v3468_v41 = vld [vmem:[%s4040_s15 + $0xac] ss:$12 sps:$4 sm:$0xff]   ;;  %v3470_v42 = vld [vmem:[%s4040_s15 + $0xa8] ss:$12 sps:$4 sm:$0xff]   ;;  %v4097_v43 = vld [vmem:[#allocation2] sm:$0xff]  ;;  %v4103_v47 = vshrl.u32 %v568_v46, 7 }
 0x1ba   : > { %714 = vmatpush1.bf16.msra.mxu0 %v3452_v30  ;;  %v4099_v44 = vld [vmem:[#allocation2 + $0x8] sm:$0xff]  ;;  %vm3812_vm0 = vmmov 0   ;;  %vm795_vm1 = vcmask 261120   ;;  %v3473_v0 = vld [vmem:[%s4040_s15 + $0x38] ss:$12 sps:$4 sm:$0xff]   ;;  %s3813_s30 = smov 64  }
 0x1bb   : > { %715 = vmatprep.subr.bf16.mxu0 %v3453_v31  ;;  %v533_v45 = vpack.c.bf16 %v4099_v44, %v4097_v43  ;;  %v570_v48 = vsub.s32 0, %v4103_v47  ;;  %v4107_v49 = vld [vmem:[%s4063_s28] ss:$8 sm:$0x7]  ;;  %v574_v50 = vsub.s32 1, %v4103_v47  ;;  %3180 = vmatprep.mubr.msk.bf16.mxu1 %vm3812_vm0, %v3811_v53  ;;  %vm4128_vm2 = vmpackc.low %vm795_vm1, %vm795_vm1  ;;  %s3814_s16 = smov 96  }
 0x1bc   : > { %v3471_v52 = vld [vmem:[%s4040_s15 + $0x8] ss:$12 sps:$4 sm:$0xff]   ;;  %v3472_v56 = vld [vmem:[%s4040_s15 + $0x20] ss:$12 sps:$4 sm:$0xff]   ;;  %v3474_v3 = vld [vmem:[%s4040_s15 + $0x50] ss:$12 sps:$4 sm:$0xff]  }
 0x1bd   : > { %v571_v51 = vrot.slane %v4107_v49, %v570_v48  ;;  %v575_v55 = vrot.slane %v4107_v49, %v574_v50  ;;  %3165 = vmatpush3.bf16.msra.mxu1 %v3471_v52  ;;  %v3475_v4 = vld [vmem:[%s4040_s15 + $0x68] ss:$12 sps:$4 sm:$0xff]   ;;  %v3476_v6 = vld [vmem:[%s4040_s15 + $0x80] ss:$12 sps:$4 sm:$0xff]   ;;  %v3477_v7 = vld [vmem:[%s4040_s15 + $0x98] ss:$12 sps:$4 sm:$0xff]  }
 0x1be   : > { %716 = vmatpush1.bf16.msra.mxu0 %v3455_v32  ;;  %3166 = vmatprep.subr.bf16.mxu1 %v3811_v53  ;;  %v3478_v8 = vld [vmem:[%s4040_s15 + $0xb0] ss:$12 sps:$4 sm:$0xff]   ;;  %v4161_v11 = vld [vmem:[%s4519_s1] sm:$0xff]  ;;  %vm887_vm3 = vcmask 130048   ;;  %v4166_v14 = vld [vmem:[%s4519_s1 + $0x8] sm:$0xff]  ;;  %v578_v19 = vsub.s32 2, %v4103_v47 }
 0x1bf   : > { %717 = vmatprep.subr.bf16.mxu0 %v3456_v33  ;;  %s3815_s15 = smov 32   ;;  %vm1207_vm4 = vcmask 523520   ;;  %vm1422_vm5 = vcmask 785920   ;;  %vm1637_vm6 = vcmask 1048320   ;;  %p3025_p7 = scmp.ne.s32.totalorder %s3893_s17, 1 }
 0x1c0   : > { %v579_v21 = vrot.slane %v4107_v49, %v578_v19  ;;  %vm3817_vm7 = vmmov (!%p3025_p7), 0  }
 0x1c1   : > { %3167 = vmatpush3.bf16.msra.mxu1 %v3472_v56 }
 0x1c2   : > { %718 = vmatpush1.bf16.msra.mxu0 %v3458_v34  ;;  %3168 = vmatprep.subr.bf16.mxu1 %v3811_v53 }
 0x1c3   : > { %719 = vmatprep.subr.bf16.mxu0 %v3459_v35 }
 0x1c5   : > { %3169 = vmatpush3.bf16.msra.mxu1 %v3473_v0 }
 0x1c6   : > { %720 = vmatpush1.bf16.msra.mxu0 %v3461_v36  ;;  %3170 = vmatprep.subr.bf16.mxu1 %v3811_v53 }
 0x1c7   : > { %721 = vmatprep.subr.bf16.mxu0 %v3462_v37 }
 0x1c9   : > { %3171 = vmatpush3.bf16.msra.mxu1 %v3474_v3 }
 0x1ca   : > { %722 = vmatpush1.bf16.msra.mxu0 %v3464_v38  ;;  %3172 = vmatprep.subr.bf16.mxu1 %v3811_v53 }
 0x1cb   : > { %723 = vmatprep.subr.bf16.mxu0 %v3465_v39 }
 0x1cd   : > { %3173 = vmatpush3.bf16.msra.mxu1 %v3475_v4 }
 0x1ce   : > { %724 = vmatpush1.bf16.msra.mxu0 %v3467_v40  ;;  %3174 = vmatprep.subr.bf16.mxu1 %v3811_v53 }
 0x1cf   : > { %725 = vmatprep.subr.bf16.mxu0 %v3468_v41 }
 0x1d1   : > { %3175 = vmatpush3.bf16.msra.mxu1 %v3476_v6 }
 0x1d2   : > { %726 = vmatpush1.bf16.msra.mxu0 %v3470_v42  ;;  %3176 = vmatprep.subr.bf16.mxu1 %v3811_v53 }
 0x1d5   : > { %744 = vmatmul.mubr.bf16.vlgmr.msra.gmra.mrb[0].mxu0 %v533_v45  ;;  %3177 = vmatpush3.bf16.msra.mxu1 %v3477_v7 }
 0x1d6   : > { %3178 = vmatprep.subr.bf16.mxu1 %v3811_v53 }
 0x1d9   : > { %3179 = vmatpush3.bf16.msra.mxu1 %v3478_v8 }
 0x1dc   : > { %3181 = vmatmul.mubr.bf16.vlgmr.msra.gmra.mrb[0].mxu1 %v533_v45 }
 0x2a8   : > { %v745_v54 = vpop.f32.mrb[0].mxu0 }
 0x2a9   : > { %v4121_v57 = vadd.f32 %v745_v54, %v571_v51  ;;  %v747_v58 = vpop.f32.mrb[1].mxu0 }
 0x2aa   : > { %v749_v59 = vpop.f32.mrb[2].mxu0  ;;  %v748_v61 = vadd.f32 %v747_v58, %v575_v55 }
 0x2ab   : > { %v751_v60 = vpop.f32.mrb[3].mxu0  ;;  %3188 = vmatprep.mubr.msk.f32.mxu0 %vm795_vm1, %v4121_v57  ;;  %v4147_v5 = vadd.f32 %v749_v59, %v571_v51 }
 0x2ac   : > { %v752_v62 = vadd.f32 %v751_v60, %v575_v55 }
 0x2ae   : > { %v4134_v1 = vpack.i.bf16 %v752_v62, %v748_v61  ;;  %v3300_v2 = vpack.c.bf16 %v752_v62, %v748_v61 }
 0x2af   : > { %v788_v20 = vpop.f32.mrb[0].mxu1 }
 0x2b0   : > { %3423 = vrot.lane.b32.xlu1 %v4134_v1, %s3813_s30  ;;  %3302 = vmatprep.subr.msk.bf16.mxu0 %vm4128_vm2, %v3300_v2  ;;  %v3182_v22 = vpop.f32.mrb[1].mxu1  ;;  %v4176_v24 = vadd.f32 %v788_v20, %v579_v21 }
 0x2b1   : > { %3305 = vmatpush3.bf16.xpose.msk.msra.mxu0 %vm4128_vm2, %v3300_v2  ;;  %v791_v23 = vpop.f32.mrb[2].mxu1 }
 0x2b2   : > { %v4178_v25 = vadd.f32 %v791_v23, %v579_v21  ;;  %v3183_v26 = vpop.f32.mrb[3].mxu1 }
 0x2b4   : > { %993 = vrot.lane.b32.xlu1 %v4121_v57, %s3814_s16  ;;  %v3306_v27 = vpack.c.bf16 %v4178_v25, %v4176_v24 }
 0x2b6   : > { %3307 = vmatprep.subr.bf16.mxu0 %v3306_v27 }
 0x2b8   : > { %3189 = vmatmul.mubr.msk.f32.vlgmr.msra.gmra.mrb[4].mxu0 %vm795_vm1, %v4147_v5 }
 0x2b9   : > { %3309 = vmatpush3.bf16.msra.mxu0 %v3306_v27 }
 0x322   : > { %v3424_v45 = vpop.permute.xlu1 %3423 }
 0x323   : > { %v3426_v55 = vunpack.i.h.bf16 %v3424_v45  ;;  %v3425_v56 = vunpack.i.l.bf16 %v3424_v45 }
 0x325   : > { %v3320_v60 = vpack.c.bf16 %v3426_v55, %v3425_v56 }
 0x326   : > { %v994_v46 = vpop.permute.xlu1 %993 }
 0x38b   : > { %v3190_v9 = vpop.f32.mrb[4].mxu0 }
 0x38c   : > { %v874_v10 = vpop.f32.mrb[5].mxu0  ;;  %v884_v12 = vmul.f32 0.17677669, %v3190_v9 }
 0x38d   : > { %v883_v13 = vmul.f32 0.17677669, %v874_v10 }
 0x38e   : > { %v886_v17 = vadd.f32 %v884_v12, %v4166_v14 }
 0x38f   : > { %v885_v15 = vadd.f32 %v883_v13, %v4161_v11 }
 0x390   : > { %v891_v18 = vsel %vm887_vm3, %v886_v17, -inf }
 0x391   : > { %v888_v16 = vsel %vm887_vm3, %v885_v15, -inf }
 0x392   : > { %889 = vmax.xlane.f32.xlu0 %v888_v16 }
 0x396   : > { %892 = vmax.xlane.f32.xlu0 %v891_v18 }
 0x3ac   : > { %3418 = vrot.lane.b32.xlu0 %v4134_v1, %s3814_s16 }
 0x3b0   : > { %1210 = vrot.lane.b32.xlu0 %v4121_v57, %s3813_s30 }
 0x41f   : > { %v890_v29 = vpop.xlane.xlu0 %889 }
 0x420   : > { %v894_v30 = vsub.f32 %v885_v15, %v890_v29 }
 0x422   : > { %v896_v33 = vmul.f32 1.442695, %v894_v30 }
 0x423   : > { %v893_v31 = vpop.xlane.xlu0 %892 }
 0x424   : > { %v895_v32 = vsub.f32 %v886_v17, %v893_v31  ;;  %v4224_v31 = vpack.i.bf16 %v4178_v25, %v4176_v24 }
 0x426   : > { %v898_v34 = vmul.f32 1.442695, %v895_v32 }
 0x427   : > { %v3419_v35 = vpop.permute.xlu0 %3418 }
 0x428   : > { %3567 = vpow2.f32 %v898_v34  ;;  %v3421_v36 = vunpack.i.h.bf16 %v3419_v35  ;;  %v3420_v37 = vunpack.i.l.bf16 %v3419_v35 }
 0x429   : > { %3569 = vpow2.f32 %v896_v33 }
 0x42a   : > { %v3310_v38 = vpack.c.bf16 %v3421_v36, %v3420_v37 }
 0x42b   : > { %v1211_v62 = vpop.permute.xlu0 %1210 }
 0x42c   : > { %3312 = vmatprep.subr.msk.bf16.mxu0 %vm4128_vm2, %v3310_v38 }
 0x432   : > { %v3568_v39 = vpop.eup %3567 }
 0x433   : > { %v903_v40 = vsel %vm887_vm3, %v3568_v39, 0.0  ;;  %v3570_v41 = vpop.eup %3569 }
 0x434   : > { %904 = vadd.xlane.f32.xlu1 %v903_v40  ;;  %v900_v42 = vsel %vm887_vm3, %v3570_v41, 0.0 }
 0x438   : > { %901 = vadd.xlane.f32.xlu1 %v900_v42 }
 0x449   : > { %995 = vrot.lane.b32.xlu1 %v4147_v5, %s3814_s16 }
 0x44d   : > { %1212 = vrot.lane.b32.xlu1 %v4147_v5, %s3813_s30 }
 0x4c1   : > { %v905_v49 = vpop.xlane.xlu1 %904 }
 0x4c2   : > { %3571 = vrcp.f32 %v905_v49 }
 0x4c5   : > { %v902_v51 = vpop.xlane.xlu1 %901 }
 0x4c6   : > { %3573 = vrcp.f32 %v902_v51 }
 0x4c9   : > { %v996_v61 = vpop.permute.xlu1 %995 }
 0x4cc   : > { %v3572_v52 = vpop.eup %3571 }
 0x4cd   : > { %v909_v59 = vmul.f32 %v3572_v52, %v3568_v39  ;;  %v1213_v0 = vpop.permute.xlu1 %1212 }
 0x4d0   : > { %v3574_v54 = vpop.eup %3573 }
 0x4d1   : > { %v908_v58 = vmul.f32 %v3574_v54, %v3570_v41 }
 0x4d3   : > { %3195 = vmatprep.mubr.msk.f32.mxu0 %vm887_vm3, %v908_v58 }
 0x4d4   : > { %3196 = vmatmul.mubr.msk.f32.vlgmr.msra.gmra.mrb[6].mxu0 %vm887_vm3, %v909_v59 }
 0x4d5   : > { %3315 = vmatpush3.bf16.xpose.msk.msra.mxu0 %vm4128_vm2, %v3310_v38  ;;  %3202 = vmatprep.mubr.msk.f32.mxu0 %vm795_vm1, %v994_v46 }
 0x4d6   : > { %3322 = vmatprep.subr.msk.bf16.mxu0 %vm4128_vm2, %v3320_v60 }
 0x4dc   : > { %3203 = vmatmul.mubr.msk.f32.vlgmr.msra.gmra.mrb[8].mxu0 %vm795_vm1, %v996_v61 }
 0x4dd   : > { %3325 = vmatpush3.bf16.xpose.msk.msra.mxu0 %vm4128_vm2, %v3320_v60  ;;  %3216 = vmatprep.mubr.msk.f32.mxu0 %vm795_vm1, %v1211_v62 }
 0x4e4   : > { %3217 = vmatmul.mubr.msk.f32.vlgmr.msra.gmra.mrb[10].mxu0 %vm795_vm1, %v1213_v0 }
 0x5a7   : > { %v3197_v2 = vpop.f32.mrb[6].mxu0 }
 0x5a8   : > { %992 = vst.msk [vmem:[#allocation3 + $0x8] sm:$0xff] %vm795_vm1, %v3197_v2  ;;  %v982_v3 = vpop.f32.mrb[7].mxu0 }
 0x5a9   : > { %991 = vst.msk [vmem:[#allocation3] sm:$0xff] %vm795_vm1, %v982_v3 }
 0x5af   : > { %v3204_v4 = vpop.f32.mrb[8].mxu0 }
 0x5b0   : > { %v1075_v6 = vpop.f32.mrb[9].mxu0  ;;  %v1085_v17 = vmul.f32 0.17677669, %v3204_v4 }
 0x5b1   : > { %v1084_v38 = vmul.f32 0.17677669, %v1075_v6 }
 0x5b2   : > { %v1087_v18 = vadd.f32 %v1085_v17, %v4166_v14 }
 0x5b3   : > { %v1086_v39 = vadd.f32 %v1084_v38, %v4161_v11 }
 0x5b4   : > { %v1091_v20 = vsel %vm887_vm3, %v1087_v18, -inf }
 0x5b5   : > { %v1088_v40 = vsel %vm887_vm3, %v1086_v39, -inf }
 0x5b7   : > { %v3218_v7 = vpop.f32.mrb[10].mxu0 }
 0x5b8   : > { %v1302_v8 = vmul.f32 0.17677669, %v3218_v7  ;;  %v1292_v9 = vpop.f32.mrb[11].mxu0 }
 0x5b9   : > { %v1301_v10 = vmul.f32 0.17677669, %v1292_v9 }
 0x5ba   : > { %v1304_v12 = vadd.f32 %v1302_v8, %v4166_v14 }
 0x5bb   : > { %v1303_v13 = vadd.f32 %v1301_v10, %v4161_v11 }
 0x5bc   : > { %v1308_v15 = vsel %vm887_vm3, %v1304_v12, -inf }
 0x5bd   : > { %1309 = vmax.xlane.f32.xlu1 %v1308_v15  ;;  %v1305_v16 = vsel %vm887_vm3, %v1303_v13, -inf }
 0x5be   : > { %1306 = vmax.xlane.f32.xlu0 %v1305_v16 }
 0x5ce   : > { %3433 = vrot.lane.b32.xlu1 %v4134_v1, %s3815_s15 }
 0x5d2   : > { %1425 = vrot.lane.b32.xlu1 %v4121_v57, %s3815_s15 }
 0x5d6   : > { %1427 = vrot.lane.b32.xlu1 %v4147_v5, %s3815_s15 }
 0x5fa   : > { %1092 = vmax.xlane.f32.xlu1 %v1091_v20 }
 0x64a   : > { %v1310_v21 = vpop.xlane.xlu1 %1309 }
 0x64b   : > { %v1312_v22 = vsub.f32 %v1304_v12, %v1310_v21  ;;  %v1307_v23 = vpop.xlane.xlu0 %1306 }
 0x64c   : > { %v1311_v26 = vsub.f32 %v1303_v13, %v1307_v23 }
 0x64d   : > { %v1315_v27 = vmul.f32 1.442695, %v1312_v22 }
 0x64e   : > { %v1313_v29 = vmul.f32 1.442695, %v1311_v26  ;;  %v3434_v32 = vpop.permute.xlu1 %3433 }
 0x64f   : > { %3575 = vpow2.f32 %v1315_v27  ;;  %v3436_v46 = vunpack.i.h.bf16 %v3434_v32  ;;  %v3435_v49 = vunpack.i.l.bf16 %v3434_v32 }
 0x650   : > { %3577 = vpow2.f32 %v1313_v29 }
 0x651   : > { %v3330_v55 = vpack.c.bf16 %v3436_v46, %v3435_v49  ;;  %v3480_v46 = vld [vmem:[%s4058_s19 + $0x8] sm:$0xff]   ;;  %v3481_v49 = vld [vmem:[%s4058_s19 + $0x10] sm:$0xff]  }
 0x652   : > { %v1426_v33 = vpop.permute.xlu1 %1425 }
 0x656   : > { %v1428_v34 = vpop.permute.xlu1 %1427 }
 0x659   : > { %v3576_v1 = vpop.eup %3575 }
 0x65a   : > { %v1320_v57 = vsel %vm887_vm3, %v3576_v1, 0.0  ;;  %v3578_v30 = vpop.eup %3577 }
 0x65b   : > { %1321 = vadd.xlane.f32.xlu0 %v1320_v57  ;;  %v1317_v5 = vsel %vm887_vm3, %v3578_v30, 0.0 }
 0x65f   : > { %1318 = vadd.xlane.f32.xlu0 %v1317_v5 }
 0x675   : > { %3428 = vrot.lane.b32.xlu0 %v4224_v31, %s3813_s30 }
 0x687   : > { %v1093_v35 = vpop.xlane.xlu1 %1092 }
 0x688   : > { %v1095_v36 = vsub.f32 %v1087_v18, %v1093_v35 }
 0x68a   : > { %v1098_v37 = vmul.f32 1.442695, %v1095_v36 }
 0x68c   : > { %3579 = vpow2.f32 %v1098_v37 }
 0x694   : > { %1089 = vmax.xlane.f32.xlu0 %v1088_v40 }
 0x696   : > { %v4230_v41 = vpop.eup %3579 }
 0x697   : > { %v1103_v24 = vsel %vm887_vm3, %v4230_v41, 0.0 }
 0x698   : > { %1104 = vadd.xlane.f32.xlu1 %v1103_v24 }
 0x6e8   : > { %v1322_v25 = vpop.xlane.xlu0 %1321 }
 0x6e9   : > { %3581 = vrcp.f32 %v1322_v25 }
 0x6ec   : > { %v1319_v42 = vpop.xlane.xlu0 %1318 }
 0x6ed   : > { %3583 = vrcp.f32 %v1319_v42 }
 0x6f0   : > { %v3429_v45 = vpop.permute.xlu0 %3428 }
 0x6f1   : > { %v3431_v51 = vunpack.i.h.bf16 %v3429_v45  ;;  %v3430_v52 = vunpack.i.l.bf16 %v3429_v45 }
 0x6f3   : > { %v3326_v54 = vpack.c.bf16 %v3431_v51, %v3430_v52  ;;  %v3582_v56 = vpop.eup %3581  ;;  %v3482_v51 = vld [vmem:[%s4058_s19 + $0x18] sm:$0xff]   ;;  %v3483_v52 = vld [vmem:[%s4058_s19 + $0x20] sm:$0xff]  }
 0x6f4   : > { %v1326_v60 = vmul.f32 %v3582_v56, %v3576_v1 }
 0x6f5   : > { %3327 = vmatprep.subr.bf16.mxu0 %v3326_v54 }
 0x6f6   : > { %3329 = vmatpush3.bf16.msra.mxu0 %v3326_v54  ;;  %v3484_v54 = vld [vmem:[%s4058_s19 + $0x28] sm:$0xff]  }
 0x6f7   : > { %v3584_v58 = vpop.eup %3583  ;;  %3332 = vmatprep.subr.msk.bf16.mxu0 %vm4128_vm2, %v3330_v55 }
 0x6f8   : > { %v1325_v59 = vmul.f32 %v3584_v58, %v3578_v30  ;;  %v3485_v58 = vld [vmem:[%s4058_s19 + $0x30] sm:$0xff]  }
 0x6fa   : > { %3223 = vmatprep.mubr.msk.f32.mxu0 %vm887_vm3, %v1325_v59  ;;  %v3486_v59 = vld [vmem:[%s4058_s19 + $0x38] sm:$0xff]  }
 0x6fb   : > { %3224 = vmatmul.mubr.msk.f32.vlgmr.msra.gmra.mrb[12].mxu0 %vm887_vm3, %v1326_v60 }
 0x6fc   : > { %3230 = vmatprep.mubr.msk.f32.mxu0 %vm795_vm1, %v1426_v33 }
 0x6ff   : > { %3335 = vmatpush3.bf16.xpose.msk.msra.mxu0 %vm4128_vm2, %v3330_v55 }
 0x706   : > { %3231 = vmatmul.mubr.msk.f32.vlgmr.msra.gmra.mrb[14].mxu0 %vm795_vm1, %v1428_v34 }
 0x707   : > { %2028 = vmatprep.mubr.bf16.mxu0 %v3810_v28 }
 0x721   : > { %v1090_v62 = vpop.xlane.xlu0 %1089 }
 0x722   : > { %v1094_v2 = vsub.f32 %v1086_v39, %v1090_v62 }
 0x724   : > { %v1096_v3 = vmul.f32 1.442695, %v1094_v2 }
 0x725   : > { %v1105_v57 = vpop.xlane.xlu1 %1104 }
 0x726   : > { %3585 = vpow2.f32 %v1096_v3 }
 0x730   : > { %v3586_v13 = vpop.eup %3585 }
 0x731   : > { %v1100_v15 = vsel %vm887_vm3, %v3586_v13, 0.0 }
 0x7ce   : > { %v4243_v61 = vpop.f32.mrb[12].mxu0 }
 0x7cf   : > { %v1405_v0 = vpop.f32.mrb[13].mxu0 }
 0x7d9   : > { %v3232_v4 = vpop.f32.mrb[14].mxu0 }
 0x7da   : > { %v1507_v6 = vpop.f32.mrb[15].mxu0  ;;  %v1517_v7 = vmul.f32 0.17677669, %v3232_v4 }
 0x7db   : > { %v1516_v8 = vmul.f32 0.17677669, %v1507_v6 }
 0x7dc   : > { %v1519_v10 = vadd.f32 %v1517_v7, %v4166_v14 }
 0x7dd   : > { %v1518_v9 = vadd.f32 %v1516_v8, %v4161_v11 }
 0x7de   : > { %v1523_v12 = vsel %vm887_vm3, %v1519_v10, -inf }
 0x7df   : > { %v1520_v63 = vsel %vm887_vm3, %v1518_v9, -inf }
 0x7e0   : > { %1521 = vmax.xlane.f32.xlu0 %v1520_v63 }
 0x7e4   : > { %1524 = vmax.xlane.f32.xlu0 %v1523_v12 }
 0x7e8   : > { %1101 = vadd.xlane.f32.xlu0 %v1100_v15 }
 0x86d   : > { %v1522_v16 = vpop.xlane.xlu0 %1521 }
 0x86e   : > { %v1526_v17 = vsub.f32 %v1518_v9, %v1522_v16  ;;  %v1659_v9 = vld [vmem:[%s4063_s28 + $0x2] ss:$0 sm:$0xff] }
 0x870   : > { %v1528_v18 = vmul.f32 1.442695, %v1526_v17 }
 0x871   : > { %v1525_v20 = vpop.xlane.xlu0 %1524 }
 0x872   : > { %3587 = vpow2.f32 %v1528_v18  ;;  %v1527_v21 = vsub.f32 %v1519_v10, %v1525_v20  ;;  %v3487_v20 = vld [vmem:[%s4047_s13] ss:$16 sps:$4 sm:$0xff]  }
 0x874   : > { %v1530_v22 = vmul.f32 1.442695, %v1527_v21  ;;  %v3489_v21 = vld [vmem:[%s4047_s13 + $0x4] ss:$16 sps:$4 sm:$0xff]  }
 0x875   : > { %v1102_v11 = vpop.xlane.xlu0 %1101  ;;  %1996 = vmatprep.subr.bf16.mxu0 %v3489_v21  ;;  %v3539_v21 = vld [vmem:[%s4065_s12 + $0x48] sm:$0xff]  }
 0x876   : > { %3589 = vpow2.f32 %v1530_v22  ;;  %v3492_v22 = vld [vmem:[%s4047_s13 + $0xc] ss:$16 sps:$4 sm:$0xff]   ;;  %1997 = vmatpush1.bf16.msra.mxu0 %v3487_v20  ;;  %v3538_v20 = vld [vmem:[%s4065_s12 + $0x80] sm:$0xff]  }
 0x877   : > { %3591 = vrcp.f32 %v1102_v11  ;;  %v3495_v11 = vld [vmem:[%s4047_s13 + $0x24] ss:$16 sps:$4 sm:$0xff]  }
 0x878   : > { %3593 = vrcp.f32 %v1105_v57  ;;  %1998 = vmatprep.subr.bf16.mxu0 %v3495_v11  ;;  %v3542_v11 = vld [vmem:[%s4065_s12 + $0x88] sm:$0xff]  }
 0x87c   : > { %v3588_v23 = vpop.eup %3587 }
 0x87d   : > { %v1532_v14 = vsel %vm887_vm3, %v3588_v23, 0.0 }
 0x87e   : > { %1533 = vadd.xlane.f32.xlu0 %v1532_v14  ;;  %v3493_v14 = vld [vmem:[%s4047_s13 + $0x20] ss:$16 sps:$4 sm:$0xff]  }
 0x87f   : > { %1999 = vmatpush1.bf16.msra.mxu0 %v3493_v14  ;;  %v3544_v14 = vld [vmem:[%s4065_s12 + $0xd0] sm:$0xff]  }
 0x880   : > { %v3590_v26 = vpop.eup %3589 }
 0x881   : > { %v3592_v27 = vpop.eup %3591  ;;  %v1535_v29 = vsel %vm887_vm3, %v3590_v26, 0.0 }
 0x882   : > { %1536 = vadd.xlane.f32.xlu1 %v1535_v29  ;;  %v1108_v1 = vmul.f32 %v3592_v27, %v3586_v13  ;;  %v3594_v36 = vpop.eup %3593 }
 0x883   : > { %v1109_v40 = vmul.f32 %v3594_v36, %v4230_v41  ;;  %v3479_v41 = vld [vmem:[%s4058_s19] sm:$0xff]  }
 0x884   : > { %3209 = vmatprep.mubr.msk.f32.mxu1 %vm887_vm3, %v1108_v1  ;;  %v3507_v36 = vld [vmem:[%s4047_s13 + $0x64] ss:$16 sps:$4 sm:$0xff]  }
 0x893   : > { %3443 = vrot.lane.b32.xlu1 %v4224_v31, %s3815_s15 }
 0x894   : > { %3438 = vrot.lane.b32.xlu0 %v4224_v31, %s3814_s16 }
 0x898   : > { %1416 = vrot.lane.b32.xlu0 %v1405_v0, %s3813_s30 }
 0x90b   : > { %v1534_v30 = vpop.xlane.xlu0 %1533 }
 0x90c   : > { %3595 = vrcp.f32 %v1534_v30 }
 0x90f   : > { %v1537_v5 = vpop.xlane.xlu1 %1536  ;;  %v3439_v32 = vpop.permute.xlu0 %3438 }
 0x910   : > { %3597 = vrcp.f32 %v1537_v5  ;;  %v3441_v33 = vunpack.i.h.bf16 %v3439_v32  ;;  %v3440_v34 = vunpack.i.l.bf16 %v3439_v32  ;;  %v3501_v32 = vld [vmem:[%s4047_s13 + $0x44] ss:$16 sps:$4 sm:$0xff]  }
 0x911   : > { %2000 = vmatprep.subr.bf16.mxu0 %v3501_v32  ;;  %v3554_v32 = vld [vmem:[%s4065_s12 + $0xa0] sm:$0xff]  }
 0x912   : > { %v3316_v35 = vpack.c.bf16 %v3441_v33, %v3440_v34  ;;  %v3504_v33 = vld [vmem:[%s4047_s13 + $0x4c] ss:$16 sps:$4 sm:$0xff]   ;;  %v3499_v34 = vld [vmem:[%s4047_s13 + $0x40] ss:$16 sps:$4 sm:$0xff]  }
 0x913   : > { %v3444_v37 = vpop.permute.xlu1 %3443  ;;  %v1417_v2 = vpop.permute.xlu0 %1416  ;;  %2001 = vmatpush1.bf16.msra.mxu0 %v3499_v34  ;;  %v3556_v34 = vld [vmem:[%s4065_s12 + $0xe8] sm:$0xff]  }
 0x914   : > { %v3446_v38 = vunpack.i.h.bf16 %v3444_v37  ;;  %v3445_v39 = vunpack.i.l.bf16 %v3444_v37  ;;  %3317 = vmatprep.subr.bf16.mxu1 %v3316_v35  ;;  %v3510_v37 = vld [vmem:[%s4047_s13 + $0x6c] ss:$16 sps:$4 sm:$0xff]   ;;  %2002 = vmatprep.subr.bf16.mxu0 %v3507_v36 }
 0x915   : > { %3319 = vmatpush3.bf16.msra.mxu1 %v3316_v35  ;;  %v3502_v35 = vld [vmem:[%s4047_s13 + $0x48] ss:$16 sps:$4 sm:$0xff]  }
 0x916   : > { %v3596_v31 = vpop.eup %3595  ;;  %v3336_v24 = vpack.c.bf16 %v3446_v38, %v3445_v39  ;;  %v3505_v38 = vld [vmem:[%s4047_s13 + $0x60] ss:$16 sps:$4 sm:$0xff]   ;;  %v3508_v39 = vld [vmem:[%s4047_s13 + $0x68] ss:$16 sps:$4 sm:$0xff]  }
 0x917   : > { %v1540_v25 = vmul.f32 %v3596_v31, %v3588_v23  ;;  %v3498_v23 = vld [vmem:[%s4047_s13 + $0x2c] ss:$16 sps:$4 sm:$0xff]   ;;  %2003 = vmatpush1.bf16.msra.mxu0 %v3505_v38  ;;  %v3513_v31 = vld [vmem:[%s4047_s13 + $0x84] ss:$16 sps:$4 sm:$0xff]  }
 0x918   : > { %3210 = vmatmul.mubr.msk.f32.vlgmr.msra.gmra.mrb[4].mxu1 %vm887_vm3, %v1109_v40  ;;  %3337 = vmatprep.subr.bf16.mxu1 %v3336_v24  ;;  %v3516_v40 = vld [vmem:[%s4047_s13 + $0x8c] ss:$16 sps:$4 sm:$0xff]   ;;  %v3560_v38 = vld [vmem:[%s4065_s12 + $0xf0] sm:$0xff]  }
 0x919   : > { %3339 = vmatpush3.bf16.msra.mxu1 %v3336_v24  ;;  %3237 = vmatprep.mubr.msk.f32.mxu1 %vm887_vm3, %v1540_v25  ;;  %v3511_v24 = vld [vmem:[%s4047_s13 + $0x80] ss:$16 sps:$4 sm:$0xff]   ;;  %v3514_v25 = vld [vmem:[%s4047_s13 + $0x88] ss:$16 sps:$4 sm:$0xff]  }
 0x91a   : > { %v3598_v42 = vpop.eup %3597  ;;  %3240 = vmatprep.subr.bf16.mxu1 %v3811_v53  ;;  %2004 = vmatprep.subr.bf16.mxu0 %v3513_v31  ;;  %v3558_v36 = vld [vmem:[%s4065_s12 + $0xa8] sm:$0xff]   ;;  %v3562_v31 = vld [vmem:[%s4065_s12 + $0xb0] sm:$0xff]  }
 0x91b   : > { %v1541_v45 = vmul.f32 %v3598_v42, %v3590_v26  ;;  %2005 = vmatpush1.bf16.msra.mxu0 %v3511_v24  ;;  %v3519_v42 = vld [vmem:[%s4047_s13 + $0xa4] ss:$16 sps:$4 sm:$0xff]   ;;  %v3564_v24 = vld [vmem:[%s4065_s12 + $0xf8] sm:$0xff]  }
 0x91c   : > { %2006 = vmatprep.subr.bf16.mxu0 %v3519_v42  ;;  %v3566_v42 = vld [vmem:[%s4065_s12 + $0xb8] sm:$0xff]  }
 0x91d   : > { %3238 = vmatmul.mubr.msk.f32.vlgmr.msra.gmra.mrb[6].mxu1 %vm887_vm3, %v1541_v45  ;;  %v3522_v45 = vld [vmem:[%s4047_s13 + $0xac] ss:$16 sps:$4 sm:$0xff]  }
 0x91e   : > { %3256 = vmatprep.mubr.msk.bf16.mxu1 %vm3812_vm0, %v3811_v53  ;;  %3241 = vmatpush3.bf16.msra.mxu1 %v3479_v41  ;;  %v3517_v41 = vld [vmem:[%s4047_s13 + $0xa0] ss:$16 sps:$4 sm:$0xff]  }
 0x91f   : > { %3242 = vmatprep.subr.bf16.mxu1 %v3811_v53  ;;  %2007 = vmatpush1.bf16.msra.mxu0 %v3517_v41  ;;  %v1830_v41 = vsub.s32 3, %v4103_v47 }
 0x922   : > { %3243 = vmatpush3.bf16.msra.mxu1 %v3480_v46  ;;  %v3520_v46 = vld [vmem:[%s4047_s13 + $0xa8] ss:$16 sps:$4 sm:$0xff]  }
 0x923   : > { %3244 = vmatprep.subr.bf16.mxu1 %v3811_v53 }
 0x926   : > { %3245 = vmatpush3.bf16.msra.mxu1 %v3481_v49  ;;  %v3525_v49 = vld [vmem:[%s4047_s13 + $0xc4] ss:$16 sps:$4 sm:$0xff]  }
 0x927   : > { %3246 = vmatprep.subr.bf16.mxu1 %v3811_v53  ;;  %2008 = vmatprep.subr.bf16.mxu0 %v3525_v49 }
 0x92a   : > { %3247 = vmatpush3.bf16.msra.mxu1 %v3482_v51  ;;  %v3528_v51 = vld [vmem:[%s4047_s13 + $0xcc] ss:$16 sps:$4 sm:$0xff]  }
 0x92b   : > { %3248 = vmatprep.subr.bf16.mxu1 %v3811_v53 }
 0x92e   : > { %3249 = vmatpush3.bf16.msra.mxu1 %v3483_v52  ;;  %v3523_v52 = vld [vmem:[%s4047_s13 + $0xc0] ss:$16 sps:$4 sm:$0xff]  }
 0x92f   : > { %3250 = vmatprep.subr.bf16.mxu1 %v3811_v53  ;;  %2009 = vmatpush1.bf16.msra.mxu0 %v3523_v52 }
 0x932   : > { %3251 = vmatpush3.bf16.msra.mxu1 %v3484_v54  ;;  %v3526_v54 = vld [vmem:[%s4047_s13 + $0xc8] ss:$16 sps:$4 sm:$0xff]  }
 0x933   : > { %3252 = vmatprep.subr.bf16.mxu1 %v3811_v53 }
 0x936   : > { %3253 = vmatpush3.bf16.msra.mxu1 %v3485_v58  ;;  %v3529_v58 = vld [vmem:[%s4047_s13 + $0xe0] ss:$16 sps:$4 sm:$0xff]  }
 0x937   : > { %3254 = vmatprep.subr.bf16.mxu1 %v3811_v53 }
 0x93a   : > { %3255 = vmatpush3.bf16.msra.mxu1 %v3486_v59  ;;  %v3532_v59 = vld [vmem:[%s4047_s13 + $0xe8] ss:$16 sps:$4 sm:$0xff]  }
 0x93b   : > { %2039 = vmatprep.subr.bf16.mxu1 %v3492_v22  ;;  %v3541_v22 = vld [vmem:[%s4065_s12 + $0x8] sm:$0xff]  }
 0x9eb   : > { %v3211_v55 = vpop.f32.mrb[4].mxu1 }
 0x9ec   : > { %v1190_v56 = vpop.f32.mrb[5].mxu1 }
 0x9ed   : > { %1201 = vrot.lane.b32.xlu1 %v1190_v56, %s3815_s15  ;;  %v3534_v56 = vld [vmem:[%s4047_s13 + $0xec] ss:$16 sps:$4 sm:$0xff]  }
 0x9f0   : > { %v3239_v60 = vpop.f32.mrb[6].mxu1 }
 0x9f1   : > { %1203 = vrot.lane.b32.xlu1 %v3211_v55, %s3815_s15  ;;  %v1620_v62 = vpop.f32.mrb[7].mxu1  ;;  %v3531_v55 = vld [vmem:[%s4047_s13 + $0xe4] ss:$16 sps:$4 sm:$0xff]  }
 0x9f2   : > { %1631 = vrot.lane.b32.xlu0 %v1620_v62, %s3814_s16  ;;  %2010 = vmatprep.subr.bf16.mxu0 %v3531_v55 }
 0x9f3   : > { %2011 = vmatpush1.bf16.msra.mxu0 %v3529_v58 }
 0x9f5   : > { %1418 = vrot.lane.b32.xlu1 %v4243_v61, %s3813_s30 }
 0x9f9   : > { %1633 = vrot.lane.b32.xlu1 %v3239_v60, %s3814_s16 }
 0xa5f   : > { %v1202_v0 = vpop.permute.xlu1 %1201 }
 0xa60   : > { %1208 = vst.msk [vmem:[#allocation3] sm:$0xff] %vm1207_vm4, %v1202_v0 }
 0xa61   : > { %1423 = vst.msk [vmem:[#allocation3] sm:$0xff] %vm1422_vm5, %v1417_v2 }
 0xa63   : > { %v1204_v53 = vpop.permute.xlu1 %1203 }
 0xa64   : > { %1209 = vst.msk [vmem:[#allocation3 + $0x8] sm:$0xff] %vm1207_vm4, %v1204_v53  ;;  %v1632_v3 = vpop.permute.xlu0 %1631 }
 0xa65   : > { %1638 = vst.msk [vmem:[#allocation3] sm:$0xff] %vm1637_vm6, %v1632_v3 }
 0xa67   : > { %v1419_v4 = vpop.permute.xlu1 %1418 }
 0xa68   : > { %1424 = vst.msk [vmem:[#allocation3 + $0x8] sm:$0xff] %vm1422_vm5, %v1419_v4 }
 0xa6b   : > { %v1634_v6 = vpop.permute.xlu1 %1633 }
 0xa6c   : > { %1639 = vst.msk [vmem:[#allocation3 + $0x8] sm:$0xff] %vm1637_vm6, %v1634_v6  ;;  %v1640_v7 = vld [vmem:[#allocation3] sm:$0xff] }
 0xa73   : > { %v1641_v61 = vld [vmem:[#allocation3 + $0x8] sm:$0xff] }
 0xa74   : > { %v1642_v8 = vpack.c.bf16 %v1641_v61, %v1640_v7  ;;  %v1751_v7 = vld [vmem:[%s4063_s28 + $0x4] ss:$0 sm:$0xff] }
 0xa76   : > { %3257 = vmatmul.mubr.bf16.vlgmr.msra.gmra.mrb[8].mxu1 %v1642_v8 }
 0xa77   : > { %2071 = vmatprep.mubr.bf16.mxu1 %v3810_v28  ;;  %v3490_v28 = vld [vmem:[%s4047_s13 + $0x8] ss:$16 sps:$4 sm:$0xff]  }
 0xa78   : > { %2040 = vmatpush1.bf16.msra.mxu1 %v3490_v28  ;;  %v3540_v28 = vld [vmem:[%s4065_s12 + $0xc8] sm:$0xff]  }
 0xa79   : > { %2041 = vmatprep.subr.bf16.mxu1 %v3498_v23  ;;  %v3543_v23 = vld [vmem:[%s4065_s12 + $0x50] sm:$0xff]  }
 0xb49   : > { %v1742_v63 = vpop.f32.mrb[8].mxu1 }
 0xb4a   : > { %v1743_v10 = vadd.f32 %v1742_v63, %v1659_v9  ;;  %v3258_v12 = vpop.f32.mrb[9].mxu1  ;;  %v1752_v63 = vld [vmem:[%s4063_s28 + $0x5] ss:$0 sm:$0xff] }
 0xb4b   : > { %v1745_v13 = vpop.f32.mrb[10].mxu1 }
 0xb4c   : > { %v1746_v15 = vadd.f32 %v1745_v13, %v1659_v9  ;;  %v3259_v16 = vpop.f32.mrb[11].mxu1  ;;  %v1749_v17 = vadd.f32 %v1743_v10, %v4097_v43  ;;  %v3496_v43 = vld [vmem:[%s4047_s13 + $0x28] ss:$16 sps:$4 sm:$0xff]  }
 0xb4d   : > { %2042 = vmatpush1.bf16.msra.mxu1 %v3496_v43  ;;  %v3535_v16 = vld [vmem:[%s4065_s12 + $0x40] sm:$0xff]   ;;  %v3545_v43 = vld [vmem:[%s4065_s12 + $0x10] sm:$0xff]  }
 0xb4e   : > { %1753 = vadd.xlane.f32.xlu0 %v1749_v17  ;;  %v1750_v18 = vadd.f32 %v1746_v15, %v4099_v44  ;;  %2043 = vmatprep.subr.bf16.mxu1 %v3504_v33  ;;  %v3555_v33 = vld [vmem:[%s4065_s12 + $0x68] sm:$0xff]  }
 0xb4f   : > { %3102 = vmatprep.subr.bf16.mxu0 %v3535_v16 }
 0xb50   : > { %1755 = vadd.xlane.f32.xlu1 %v1750_v18 }
 0xb51   : > { %2044 = vmatpush1.bf16.msra.mxu1 %v3502_v35  ;;  %v3557_v35 = vld [vmem:[%s4065_s12 + $0x28] sm:$0xff]  }
 0xb52   : > { %2045 = vmatprep.subr.bf16.mxu1 %v3510_v37  ;;  %v3559_v37 = vld [vmem:[%s4065_s12 + $0x70] sm:$0xff]  }
 0xb55   : > { %2046 = vmatpush1.bf16.msra.mxu1 %v3508_v39  ;;  %v3561_v39 = vld [vmem:[%s4065_s12 + $0x30] sm:$0xff]  }
 0xb56   : > { %2047 = vmatprep.subr.bf16.mxu1 %v3516_v40  ;;  %v3563_v40 = vld [vmem:[%s4065_s12 + $0x78] sm:$0xff]  }
 0xb59   : > { %2048 = vmatpush1.bf16.msra.mxu1 %v3514_v25  ;;  %v3565_v25 = vld [vmem:[%s4065_s12 + $0x38] sm:$0xff]  }
 0xb5a   : > { %2049 = vmatprep.subr.bf16.mxu1 %v3522_v45  ;;  %v2960_v45 = vld [vmem:[%s4063_s28 + $0x1] ss:$8 sm:$0xf] }
 0xb5b   : > { %v1827_v49 = vrot.slane %v2960_v45, %v578_v19  ;;  %v1831_v52 = vrot.slane %v2960_v45, %v1830_v41 }
 0xb5d   : > { %2050 = vmatpush1.bf16.msra.mxu1 %v3520_v46  ;;  %v1819_v46 = vrot.slane %v2960_v45, %v570_v48 }
 0xb5e   : > { %2051 = vmatprep.subr.bf16.mxu1 %v3528_v51  ;;  %v1823_v51 = vrot.slane %v2960_v45, %v574_v50 }
 0xb61   : > { %2052 = vmatpush1.bf16.msra.mxu1 %v3526_v54 }
 0xb62   : > { %2053 = vmatprep.subr.bf16.mxu1 %v3534_v56 }
 0xb65   : > { %2054 = vmatpush1.bf16.msra.mxu1 %v3532_v59 }
 0xbdb   : > { %v1754_v44 = vpop.xlane.xlu0 %1753 }
 0xbdc   : > { %v1758_v26 = vmul.f32 0.0078125, %v1754_v44  ;;  %v3546_v44 = vld [vmem:[%s4065_s12 + $0x90] sm:$0xff]  }
 0xbdd   : > { %v1756_v27 = vpop.xlane.xlu1 %1755 }
 0xbde   : > { %v4298_v29 = vsub.f32 %v1749_v17, %v1758_v26  ;;  %v1759_v1 = vmul.f32 0.0078125, %v1756_v27  ;;  %v3536_v17 = vld [vmem:[%s4065_s12 + $0xc0] sm:$0xff]   ;;  %v3547_v26 = vld [vmem:[%s4065_s12 + $0x58] sm:$0xff]  }
 0xbdf   : > { %3124 = vmatprep.subr.bf16.mxu1 %v3536_v17  ;;  %v3548_v27 = vld [vmem:[%s4065_s12 + $0xd8] sm:$0xff]  }
 0xbe0   : > { %v4300_v57 = vsub.f32 %v1750_v18, %v1759_v1  ;;  %v1762_v30 = vmul.f32 %v4298_v29, %v4298_v29  ;;  %v3537_v18 = vld [vmem:[%s4065_s12] sm:$0xff]   ;;  %v3550_v1 = vld [vmem:[%s4065_s12 + $0x98] sm:$0xff]  }
 0xbe2   : > { %1764 = vadd.xlane.f32.xlu0 %v1762_v30  ;;  %v1763_v5 = vmul.f32 %v4300_v57, %v4300_v57  ;;  %v3552_v30 = vld [vmem:[%s4065_s12 + $0xe0] sm:$0xff]  }
 0xbe6   : > { %1766 = vadd.xlane.f32.xlu0 %v1763_v5  ;;  %v3553_v5 = vld [vmem:[%s4065_s12 + $0x20] sm:$0xff]  }
 0xc6f   : > { %v1765_v60 = vpop.xlane.xlu0 %1764 }
 0xc70   : > { %v1768_v62 = vmul.f32 0.0078125, %v1765_v60 }
 0xc72   : > { %v1770_v0 = vadd.f32 1e-12, %v1768_v62 }
 0xc73   : > { %v1767_v2 = vpop.xlane.xlu0 %1766 }
 0xc74   : > { %3599 = vrsqrt.f32 %v1770_v0  ;;  %v1769_v53 = vmul.f32 0.0078125, %v1767_v2 }
 0xc76   : > { %v1771_v3 = vadd.f32 1e-12, %v1769_v53 }
 0xc78   : > { %3601 = vrsqrt.f32 %v1771_v3 }
 0xc7e   : > { %v3600_v4 = vpop.eup %3599 }
 0xc7f   : > { %v1774_v6 = vmul.f32 %v3600_v4, %v4298_v29  ;;  %v3549_v29 = vld [vmem:[%s4065_s12 + $0x18] sm:$0xff]  }
 0xc81   : > { %v1776_v9 = vmul.f32 %v1774_v6, %v1751_v7 }
 0xc82   : > { %v3602_v61 = vpop.eup %3601 }
 0xc83   : > { %v1775_v8 = vmul.f32 %v3602_v61, %v4300_v57  ;;  %v4334_v12 = vadd.f32 %v1776_v9, %v1752_v63  ;;  %v3551_v57 = vld [vmem:[%s4065_s12 + $0x60] sm:$0xff]  }
 0xc85   : > { %v1777_v10 = vmul.f32 %v1775_v8, %v1751_v7 }
 0xc87   : > { %v4336_v13 = vadd.f32 %v1777_v10, %v1752_v63 }
 0xc89   : > { %v1780_v15 = vpack.c.bf16 %v4336_v13, %v4334_v12 }
 0xc8b   : > { %2029 = vmatmul.mubr.bf16.vlgmr.msra.gmra.mrb[16].mxu0 %v1780_v15  ;;  %2072 = vmatmul.mubr.bf16.vlgmr.msra.gmra.mrb[12].mxu1 %v1780_v15 }
 0xc8c   : > { %3103 = vmatpush3.bf16.msra.mxu0 %v3537_v18  ;;  %3125 = vmatpush3.bf16.msra.mxu1 %v3538_v20 }
 0xc8d   : > { %3104 = vmatprep.subr.bf16.mxu0 %v3539_v21  ;;  %3126 = vmatprep.subr.bf16.mxu1 %v3540_v28 }
 0xc90   : > { %3105 = vmatpush3.bf16.msra.mxu0 %v3541_v22  ;;  %3127 = vmatpush3.bf16.msra.mxu1 %v3542_v11 }
 0xc91   : > { %3106 = vmatprep.subr.bf16.mxu0 %v3543_v23  ;;  %3128 = vmatprep.subr.bf16.mxu1 %v3544_v14 }
 0xc94   : > { %3107 = vmatpush3.bf16.msra.mxu0 %v3545_v43  ;;  %3129 = vmatpush3.bf16.msra.mxu1 %v3546_v44 }
 0xc95   : > { %3108 = vmatprep.subr.bf16.mxu0 %v3547_v26  ;;  %3130 = vmatprep.subr.bf16.mxu1 %v3548_v27 }
 0xc98   : > { %3109 = vmatpush3.bf16.msra.mxu0 %v3549_v29  ;;  %3131 = vmatpush3.bf16.msra.mxu1 %v3550_v1 }
 0xc99   : > { %3110 = vmatprep.subr.bf16.mxu0 %v3551_v57  ;;  %3132 = vmatprep.subr.bf16.mxu1 %v3552_v30 }
 0xc9c   : > { %3111 = vmatpush3.bf16.msra.mxu0 %v3553_v5  ;;  %3133 = vmatpush3.bf16.msra.mxu1 %v3554_v32 }
 0xc9d   : > { %3112 = vmatprep.subr.bf16.mxu0 %v3555_v33  ;;  %3134 = vmatprep.subr.bf16.mxu1 %v3556_v34 }
 0xca0   : > { %3113 = vmatpush3.bf16.msra.mxu0 %v3557_v35  ;;  %3135 = vmatpush3.bf16.msra.mxu1 %v3558_v36 }
 0xca1   : > { %3114 = vmatprep.subr.bf16.mxu0 %v3559_v37  ;;  %3136 = vmatprep.subr.bf16.mxu1 %v3560_v38 }
 0xca4   : > { %3115 = vmatpush3.bf16.msra.mxu0 %v3561_v39  ;;  %3137 = vmatpush3.bf16.msra.mxu1 %v3562_v31 }
 0xca5   : > { %3116 = vmatprep.subr.bf16.mxu0 %v3563_v40  ;;  %3138 = vmatprep.subr.bf16.mxu1 %v3564_v24 }
 0xca8   : > { %3117 = vmatpush3.bf16.msra.mxu0 %v3565_v25  ;;  %3139 = vmatpush3.bf16.msra.mxu1 %v3566_v42 }
 0xd5e   : > { %v2030_v54 = vpop.f32.mrb[16].mxu0  ;;  %v2073_v55 = vpop.f32.mrb[12].mxu1 }
 0xd5f   : > { %v4380_v56 = vadd.f32 %v2030_v54, %v1819_v46  ;;  %v4382_v58 = vadd.f32 %v2073_v55, %v1827_v49  ;;  %v2032_v59 = vpop.f32.mrb[17].mxu0  ;;  %v2075_v60 = vpop.f32.mrb[13].mxu1 }
 0xd60   : > { %v4384_v62 = vadd.f32 %v2032_v59, %v1823_v51  ;;  %v4386_v0 = vadd.f32 %v2075_v60, %v1831_v52  ;;  %v2034_v48 = vpop.f32.mrb[18].mxu0  ;;  %v2077_v2 = vpop.f32.mrb[14].mxu1 }
 0xd61   : > { %v2090_v19 = vmul.f32 0.044715, %v4380_v56  ;;  %v2092_v47 = vmul.f32 0.044715, %v4382_v58  ;;  %v2035_v50 = vadd.f32 %v2034_v48, %v1819_v46  ;;  %v2078_v53 = vadd.f32 %v2077_v2, %v1827_v49  ;;  %v2036_v3 = vpop.f32.mrb[19].mxu0  ;;  %v2079_v4 = vpop.f32.mrb[15].mxu1 }
 0xd62   : > { %v2091_v6 = vmul.f32 0.044715, %v4384_v62  ;;  %v2093_v7 = vmul.f32 0.044715, %v4386_v0  ;;  %v4392_v61 = vadd.f32 %v2036_v3, %v1823_v51  ;;  %v4394_v8 = vadd.f32 %v2079_v4, %v1831_v52 }
 0xd63   : > { %v2098_v9 = vmul.f32 %v2090_v19, %v4380_v56  ;;  %v2100_v63 = vmul.f32 %v2092_v47, %v4382_v58  ;;  %v2094_v10 = vmul.f32 0.044715, %v2035_v50  ;;  %v2096_v15 = vmul.f32 0.044715, %v2078_v53 }
 0xd64   : > { %v2099_v16 = vmul.f32 %v2091_v6, %v4384_v62  ;;  %v2101_v17 = vmul.f32 %v2093_v7, %v4386_v0  ;;  %v2095_v18 = vmul.f32 0.044715, %v4392_v61  ;;  %v2097_v20 = vmul.f32 0.044715, %v4394_v8 }
 0xd65   : > { %v2106_v21 = vmul.f32 %v2098_v9, %v4380_v56  ;;  %v2108_v28 = vmul.f32 %v2100_v63, %v4382_v58  ;;  %v2102_v22 = vmul.f32 %v2094_v10, %v2035_v50  ;;  %v2104_v11 = vmul.f32 %v2096_v15, %v2078_v53 }
 0xd66   : > { %v2107_v23 = vmul.f32 %v2099_v16, %v4384_v62  ;;  %v2109_v14 = vmul.f32 %v2101_v17, %v4386_v0  ;;  %v2103_v43 = vmul.f32 %v2095_v18, %v4392_v61  ;;  %v2105_v44 = vmul.f32 %v2097_v20, %v4394_v8 }
 0xd67   : > { %v2114_v26 = vadd.f32 %v2106_v21, %v4380_v56  ;;  %v2116_v27 = vadd.f32 %v2108_v28, %v4382_v58  ;;  %v2110_v29 = vmul.f32 %v2102_v22, %v2035_v50  ;;  %v2112_v1 = vmul.f32 %v2104_v11, %v2078_v53 }
 0xd68   : > { %v2111_v57 = vmul.f32 %v2103_v43, %v4392_v61  ;;  %v2113_v30 = vmul.f32 %v2105_v44, %v4394_v8  ;;  %v2115_v35 = vadd.f32 %v2107_v23, %v4384_v62  ;;  %v2117_v39 = vadd.f32 %v2109_v14, %v4386_v0  ;;  %v2222_v14 = vld [vmem:[%s4063_s28 + $0x3] ss:$0 sm:$0xff] }
 0xd69   : > { %v2122_v5 = vmul.f32 0.7978846, %v2114_v26  ;;  %v2124_v32 = vmul.f32 0.7978846, %v2116_v27  ;;  %v2118_v33 = vadd.f32 %v2110_v29, %v2035_v50  ;;  %v2120_v34 = vadd.f32 %v2112_v1, %v2078_v53 }
 0xd6a   : > { %v2119_v36 = vadd.f32 %v2111_v57, %v4392_v61  ;;  %v2123_v31 = vmul.f32 0.7978846, %v2115_v35  ;;  %v2121_v24 = vadd.f32 %v2113_v30, %v4394_v8  ;;  %v2125_v25 = vmul.f32 0.7978846, %v2117_v39 }
 0xd6b   : > { %3603 = vtanh.f32 %v2122_v5  ;;  %v2126_v37 = vmul.f32 0.7978846, %v2118_v33  ;;  %v2128_v38 = vmul.f32 0.7978846, %v2120_v34  ;;  %v2082_v54 = vmul.f32 0.5, %v4380_v56 }
 0xd6c   : > { %3605 = vtanh.f32 %v2124_v32  ;;  %v2127_v40 = vmul.f32 0.7978846, %v2119_v36  ;;  %v2129_v42 = vmul.f32 0.7978846, %v2121_v24  ;;  %v2086_v55 = vmul.f32 0.5, %v2035_v50 }
 0xd6d   : > { %3607 = vtanh.f32 %v2126_v37  ;;  %v2084_v48 = vmul.f32 0.5, %v4382_v58  ;;  %v2088_v2 = vmul.f32 0.5, %v2078_v53  ;;  %v2083_v3 = vmul.f32 0.5, %v4384_v62 }
 0xd6e   : > { %3609 = vtanh.f32 %v2128_v38  ;;  %v2087_v63 = vmul.f32 0.5, %v4392_v61  ;;  %v2085_v50 = vmul.f32 0.5, %v4386_v0  ;;  %v2089_v17 = vmul.f32 0.5, %v4394_v8 }
 0xd6f   : > { %3611 = vtanh.f32 %v2123_v31 }
 0xd70   : > { %3613 = vtanh.f32 %v2127_v40 }
 0xd71   : > { %3615 = vtanh.f32 %v2125_v25 }
 0xd72   : > { %3617 = vtanh.f32 %v2129_v42 }
 0xd75   : > { %v3604_v45 = vpop.eup %3603 }
 0xd76   : > { %v3606_v41 = vpop.eup %3605  ;;  %v2138_v46 = vadd.f32 1.0, %v3604_v45 }
 0xd77   : > { %v3608_v49 = vpop.eup %3607  ;;  %v2140_v51 = vadd.f32 1.0, %v3606_v41 }
 0xd78   : > { %v3610_v52 = vpop.eup %3609  ;;  %v2142_v59 = vadd.f32 1.0, %v3608_v49  ;;  %v2146_v6 = vmul.f32 %v2138_v46, %v2082_v54  ;;  %v2499_v54 = vld [vmem:[%s4063_s28 + $0x6] ss:$0 sm:$0xff] }
 0xd79   : > { %v3612_v60 = vpop.eup %3611  ;;  %v2144_v19 = vadd.f32 1.0, %v3610_v52  ;;  %v2148_v15 = vmul.f32 %v2140_v51, %v2084_v48 }
 0xd7a   : > { %v3614_v47 = vpop.eup %3613  ;;  %v2139_v4 = vadd.f32 1.0, %v3612_v60  ;;  %v2150_v7 = vmul.f32 %v2142_v59, %v2086_v55  ;;  %v2500_v60 = vld [vmem:[%s4063_s28 + $0x7] ss:$0 sm:$0xff] }
 0xd7b   : > { %v3616_v9 = vpop.eup %3615  ;;  %v2143_v10 = vadd.f32 1.0, %v3614_v47  ;;  %v2152_v16 = vmul.f32 %v2144_v19, %v2088_v2 }
 0xd7c   : > { %v3618_v56 = vpop.eup %3617  ;;  %v2141_v58 = vadd.f32 1.0, %v3616_v9  ;;  %v2154_v53 = vpack.c.bf16 %v2150_v7, %v2146_v6  ;;  %v2147_v18 = vmul.f32 %v2139_v4, %v2083_v3  ;;  %v3816_v4 = vmov (!%p3025_p7), 0.0   ;;  %v3623_v6 = vld [vmem:[%s4526_s8] ss:$8 sps:$4 sm:$0xff] (!%p3025_p7)   ;;  %v3624_v7 = vld [vmem:[%s4526_s8 + $0x10] ss:$8 sps:$4 sm:$0xff] (!%p3025_p7)  }
 0xd7d   : > { %v2151_v20 = vmul.f32 %v2143_v10, %v2087_v63  ;;  %v2145_v62 = vadd.f32 1.0, %v3618_v56  ;;  %v2156_v21 = vpack.c.bf16 %v2152_v16, %v2148_v15  ;;  %3260 = vmatprep.subr.bf16.mxu0 (!%p3025_p7), %v3816_v4  ;;  %3280 = vmatprep.subr.bf16.mxu1 (!%p3025_p7), %v3816_v4  ;;  %v3625_v9 = vld [vmem:[%s4526_s8 + $0x20] ss:$8 sps:$4 sm:$0xff] (!%p3025_p7)   ;;  %v3631_v63 = vld [vmem:[%s4526_s8 + $0x4] ss:$8 sps:$4 sm:$0xff] (!%p3025_p7)  }
 0xd7e   : > { %v2149_v22 = vmul.f32 %v2141_v58, %v2085_v50  ;;  %v3626_v10 = vld [vmem:[%s4526_s8 + $0x30] ss:$8 sps:$4 sm:$0xff] (!%p3025_p7)   ;;  %v3632_v15 = vld [vmem:[%s4526_s8 + $0x14] ss:$8 sps:$4 sm:$0xff] (!%p3025_p7)   ;;  %v3627_v16 = vld [vmem:[%s4526_s8 + $0x40] ss:$8 sps:$4 sm:$0xff] (!%p3025_p7)  }
 0xd7f   : > { %v2155_v28 = vpack.c.bf16 %v2151_v20, %v2147_v18  ;;  %v2153_v11 = vmul.f32 %v2145_v62, %v2089_v17  ;;  %v3633_v56 = vld [vmem:[%s4526_s8 + $0x24] ss:$8 sps:$4 sm:$0xff] (!%p3025_p7)   ;;  %v3628_v50 = vld [vmem:[%s4526_s8 + $0x50] ss:$8 sps:$4 sm:$0xff] (!%p3025_p7)   ;;  %v3634_v17 = vld [vmem:[%s4526_s8 + $0x34] ss:$8 sps:$4 sm:$0xff] (!%p3025_p7)  }
 0xd80   : > { %v3629_v58 = vld [vmem:[%s4526_s8 + $0x60] ss:$8 sps:$4 sm:$0xff] (!%p3025_p7)   ;;  %v3635_v62 = vld [vmem:[%s4526_s8 + $0x44] ss:$8 sps:$4 sm:$0xff] (!%p3025_p7)  }
 0xd81   : > { %2447 = vmatprep.mubr.bf16.mxu0 %v2155_v28  ;;  %v2157_v61 = vpack.c.bf16 %v2153_v11, %v2149_v22  ;;  %v3637_v28 = vld [vmem:[%s4526_s8 + $0x64] ss:$8 sps:$4 sm:$0xff] (!%p3025_p7)   ;;  %v3638_v22 = vld [vmem:[%s4526_s8 + $0x74] ss:$8 sps:$4 sm:$0xff] (!%p3025_p7)   ;;  %v3026_v11 = vld [vmem:[%s4527_s9] ss:$0 sm:$0xff] (!%p3025_p7) }
 0xd82   : > { %2448 = vmatmul.mubr.bf16.vlgmr.msra.gmra.mrb[20].mxu0 %v2154_v53  ;;  %v3630_v53 = vld [vmem:[%s4526_s8 + $0x70] ss:$8 sps:$4 sm:$0xff] (!%p3025_p7)  }
 0xd83   : > { %2488 = vmatprep.mubr.bf16.mxu1 %v2157_v61  ;;  %3276 = vmatprep.mubr.msk.bf16.mxu0 (!%p3025_p7), %vm3817_vm7, %v3816_v4 }
 0xd84   : > { %2489 = vmatmul.mubr.bf16.vlgmr.msra.gmra.mrb[16].mxu1 %v2156_v21  ;;  %3261 = vmatpush3.bf16.msra.mxu0 (!%p3025_p7), %v3623_v6  ;;  %v3636_v21 = vld [vmem:[%s4526_s8 + $0x54] ss:$8 sps:$4 sm:$0xff] (!%p3025_p7)  }
 0xd85   : > { %3296 = vmatprep.mubr.msk.bf16.mxu1 (!%p3025_p7), %vm3817_vm7, %v3816_v4  ;;  %3262 = vmatprep.subr.bf16.mxu0 (!%p3025_p7), %v3816_v4 }
 0xd86   : > { %3281 = vmatpush3.bf16.msra.mxu1 (!%p3025_p7), %v3631_v63 }
 0xd87   : > { %3282 = vmatprep.subr.bf16.mxu1 (!%p3025_p7), %v3816_v4 }
 0xd88   : > { %3263 = vmatpush3.bf16.msra.mxu0 (!%p3025_p7), %v3624_v7 }
 0xd89   : > { %3264 = vmatprep.subr.bf16.mxu0 (!%p3025_p7), %v3816_v4 }
 0xd8a   : > { %3283 = vmatpush3.bf16.msra.mxu1 (!%p3025_p7), %v3632_v15 }
 0xd8b   : > { %3284 = vmatprep.subr.bf16.mxu1 (!%p3025_p7), %v3816_v4 }
 0xd8c   : > { %3265 = vmatpush3.bf16.msra.mxu0 (!%p3025_p7), %v3625_v9 }
 0xd8d   : > { %3266 = vmatprep.subr.bf16.mxu0 (!%p3025_p7), %v3816_v4 }
 0xd8e   : > { %3285 = vmatpush3.bf16.msra.mxu1 (!%p3025_p7), %v3633_v56 }
 0xd8f   : > { %3286 = vmatprep.subr.bf16.mxu1 (!%p3025_p7), %v3816_v4 }
 0xd90   : > { %3267 = vmatpush3.bf16.msra.mxu0 (!%p3025_p7), %v3626_v10 }
 0xd91   : > { %3268 = vmatprep.subr.bf16.mxu0 (!%p3025_p7), %v3816_v4 }
 0xd92   : > { %3287 = vmatpush3.bf16.msra.mxu1 (!%p3025_p7), %v3634_v17 }
 0xd93   : > { %3288 = vmatprep.subr.bf16.mxu1 (!%p3025_p7), %v3816_v4 }
 0xd94   : > { %3269 = vmatpush3.bf16.msra.mxu0 (!%p3025_p7), %v3627_v16 }
 0xd95   : > { %3270 = vmatprep.subr.bf16.mxu0 (!%p3025_p7), %v3816_v4 }
 0xd96   : > { %3289 = vmatpush3.bf16.msra.mxu1 (!%p3025_p7), %v3635_v62 }
 0xd97   : > { %3290 = vmatprep.subr.bf16.mxu1 (!%p3025_p7), %v3816_v4 }
 0xd98   : > { %3271 = vmatpush3.bf16.msra.mxu0 (!%p3025_p7), %v3628_v50 }
 0xd99   : > { %3272 = vmatprep.subr.bf16.mxu0 (!%p3025_p7), %v3816_v4 }
 0xd9a   : > { %3291 = vmatpush3.bf16.msra.mxu1 (!%p3025_p7), %v3636_v21 }
 0xd9b   : > { %3292 = vmatprep.subr.bf16.mxu1 (!%p3025_p7), %v3816_v4 }
 0xd9c   : > { %3273 = vmatpush3.bf16.msra.mxu0 (!%p3025_p7), %v3629_v58 }
 0xd9d   : > { %3274 = vmatprep.subr.bf16.mxu0 (!%p3025_p7), %v3816_v4 }
 0xd9e   : > { %3293 = vmatpush3.bf16.msra.mxu1 (!%p3025_p7), %v3637_v28 }
 0xd9f   : > { %3294 = vmatprep.subr.bf16.mxu1 (!%p3025_p7), %v3816_v4 }
 0xda0   : > { %3275 = vmatpush3.bf16.msra.mxu0 (!%p3025_p7), %v3630_v53 }
 0xda2   : > { %3295 = vmatpush3.bf16.msra.mxu1 (!%p3025_p7), %v3638_v22 }
 0xe55   : > { %v3118_v23 = vpop.f32.mrb[20].mxu0 }
 0xe56   : > { %v3119_v0 = vpop.f32.mrb[21].mxu0 }
 0xe57   : > { %v3140_v43 = vpop.f32.mrb[16].mxu1  ;;  %v3120_v8 = vadd.f32 %v3119_v0, %v3118_v23  ;;  %v3121_v44 = vpop.f32.mrb[22].mxu0 }
 0xe58   : > { %v3141_v26 = vpop.f32.mrb[17].mxu1  ;;  %v3122_v27 = vpop.f32.mrb[23].mxu0 }
 0xe59   : > { %v2450_v29 = vadd.f32 %v3120_v8, %v2222_v14  ;;  %v3142_v1 = vadd.f32 %v3141_v26, %v3140_v43  ;;  %v3143_v57 = vpop.f32.mrb[18].mxu1  ;;  %v3123_v30 = vadd.f32 %v3122_v27, %v3121_v44  ;;  %v3035_v26 = vld [vmem:[%s4527_s9 + $0x1] ss:$0 sm:$0xff] (!%p3025_p7) }
 0xe5a   : > { %v3144_v5 = vpop.f32.mrb[19].mxu1 }
 0xe5b   : > { %v2491_v32 = vadd.f32 %v3142_v1, %v2450_v29  ;;  %v2453_v33 = vadd.f32 %v3123_v30, %v2222_v14  ;;  %v3145_v34 = vadd.f32 %v3144_v5, %v3143_v57 }
 0xe5d   : > { %v2494_v35 = vadd.f32 %v3145_v34, %v2453_v33  ;;  %v2497_v36 = vadd.f32 %v2491_v32, %v4334_v12 }
 0xe5f   : > { %2501 = vadd.xlane.f32.xlu0 %v2497_v36  ;;  %v2498_v37 = vadd.f32 %v2494_v35, %v4336_v13 }
 0xe61   : > { %2503 = vadd.xlane.f32.xlu1 %v2498_v37 }
 0xeec   : > { %v2502_v38 = vpop.xlane.xlu0 %2501 }
 0xeed   : > { %v2505_v39 = vmul.f32 0.0078125, %v2502_v38 }
 0xeee   : > { %v2504_v31 = vpop.xlane.xlu1 %2503 }
 0xeef   : > { %v2507_v40 = vsub.f32 %v2497_v36, %v2505_v39  ;;  %v2506_v24 = vmul.f32 0.0078125, %v2504_v31 }
 0xef1   : > { %v2508_v25 = vsub.f32 %v2498_v37, %v2506_v24  ;;  %v2509_v42 = vmul.f32 %v2507_v40, %v2507_v40 }
 0xef3   : > { %2511 = vadd.xlane.f32.xlu0 %v2509_v42  ;;  %v2510_v45 = vmul.f32 %v2508_v25, %v2508_v25 }
 0xef5   : > { %2513 = vadd.xlane.f32.xlu1 %v2510_v45 }
 0xf80   : > { %v2512_v41 = vpop.xlane.xlu0 %2511 }
 0xf81   : > { %v2515_v46 = vmul.f32 0.0078125, %v2512_v41 }
 0xf82   : > { %v2514_v49 = vpop.xlane.xlu1 %2513 }
 0xf83   : > { %v2517_v12 = vadd.f32 1e-12, %v2515_v46  ;;  %v2516_v51 = vmul.f32 0.0078125, %v2514_v49 }
 0xf85   : > { %3619 = vrsqrt.f32 %v2517_v12  ;;  %v2518_v13 = vadd.f32 1e-12, %v2516_v51 }
 0xf87   : > { %3621 = vrsqrt.f32 %v2518_v13 }
 0xf8f   : > { %v3620_v52 = vpop.eup %3619 }
 0xf90   : > { %v2521_v55 = vmul.f32 %v3620_v52, %v2507_v40 }
 0xf91   : > { %v3622_v59 = vpop.eup %3621 }
 0xf92   : > { %v2523_v48 = vmul.f32 %v2521_v55, %v2499_v54  ;;  %v2522_v2 = vmul.f32 %v3622_v59, %v2508_v25  ;;  %2532 = sbr.rel (%p3025_p7) target bundleno = 4444 (0x115c), region = 80 }
 0xf94   : > { %v2525_v19 = vadd.f32 %v2523_v48, %v2500_v60  ;;  %v2524_v47 = vmul.f32 %v2522_v2, %v2499_v54 }
 0xf96   : > { %2527 = vst [vmem:[#allocation2] sm:$0xff] %v2525_v19  ;;  %v2526_v3 = vadd.f32 %v2524_v47, %v2500_v60 }
 0xf98   : > { %2528 = vst [vmem:[#allocation2 + $0x8] sm:$0xff] %v2526_v3 }
 0xf9f   : > { %v2533_v18 = vld [vmem:[#allocation2] ss:$8 sm:$0x3] }
 0xfa0   : > { %v2534_v20 = vpack.c.bf16 %v2533_v18, %v2533_v18 }
 0xfa2   : > { %3277 = vmatmul.mubr.bf16.vlgmr.msra.gmra.mrb[0].mxu0 %v2534_v20 }
0x1075   : > { %v2640_v61 = vpop.f32.mrb[0].mxu0 }
0x1076   : > { %v2641_v23 = vadd.f32 %v3026_v11, %v2640_v61  ;;  %v3278_v14 = vpop.f32.mrb[1].mxu0 }
0x1077   : > { %v2643_v0 = vpop.f32.mrb[2].mxu0 }
0x1078   : > { %3639 = vtanh.f32 %v2641_v23  ;;  %v3279_v43 = vpop.f32.mrb[3].mxu0 }
0x1082   : > { %v3640_v8 = vpop.eup %3639 }
0x1083   : > { %v2647_v44 = vpack.c.bf16 %v3640_v8, %v3640_v8 }
0x1085   : > { %3297 = vmatmul.mubr.bf16.vlgmr.msra.gmra.mrb[0].mxu1 %v2647_v44 }
0x1158   : > { %v2753_v27 = vpop.f32.mrb[0].mxu1 }
0x1159   : > { %v2754_v29 = vadd.f32 %v3035_v26, %v2753_v27  ;;  %v3298_v1 = vpop.f32.mrb[1].mxu1 }
0x115a   : > { %v2756_v57 = vpop.f32.mrb[2].mxu1 }
0x115b   : > { %2759 = vst [vmem:[#allocation10] sm:$0x3] %v2754_v29  ;;  %v3299_v30 = vpop.f32.mrb[3].mxu1 }
0x115c PF: > { %p3364_p12 = scmp.eq.s32.totalorder %s3893_s17, 1  ;;  %s3818_s25 = smov [#allocation10]  }
0x115d   : > { %s2767_s15 = sshll.u32 %s3818_s25, 4  ;;  %s2768_s15 = int_to_ptr.vmem [resolvable:$true] %s2767_s15 }
0x115e   : > { %s3731_s13 = scalar_lea.vmem %s2768_s15, 32  ;;  %p3738_p6 = scmp.lt.s32.totalorder %s2768_s15, %s2768_s15 }
0x115f   : > { %p3732_p2 = scmp.ne.s32.totalorder %s2768_s15, %s3731_s13  ;;  %p3739_p4 = scmp.lt.s32.totalorder %s3731_s13, %s3731_s13 }
0x1161   : > { %p3733_p3 = pnand %p3732_p2, %p3364_p12  ;;  %p3740_p1 = por %p3739_p4, %p3738_p6 }
0x1163   : > { %p3734_p5 = pneg %p3733_p3 }
0x1165   : > { %p3741_p11 = pnand %p3740_p1, %p3734_p5 }
0x1167   : > { %3744 = shalt.err (!%p3741_p11)
}
0x1168   : > { %s3745_s12 = scalar_lea.hbm %s4528_s10, 32 }
0x1169   : > { %p3746_p13 = scmp.ne.s32.totalorder %s4528_s10, %s3745_s12  ;;  %p3751_p8 = scmp.lt.u32.totalorder %s3745_s12, %s4528_s10 }
0x116b   : > { %p3747_p10 = pnand %p3746_p13, %p3364_p12 }
0x116d   : > { %p3748_p9 = pneg %p3747_p10 }
0x116f   : > { %p3753_p0 = pnand %p3751_p8, %p3748_p9 }
0x1171   : > { %3756 = shalt.err (!%p3753_p0)
}
0x1172   : > { %3350 = dma.vmem_to_hbm [thread:$0]  (%p3364_p12), %s2768_s15, 32, %s4528_s10, [#allocation6]  }
0x1173   : > { %3782 = dma.done.wait (%p3364_p12), [#allocation6], 32  }
0x1174   : > { %3784 = vsyncadd (%p3364_p12), [#allocation6], 4294967264 }
0x1175 PF: > { %s4550_s16 = sld [smem:[#allocation15_spill]]  ;;  %s4551_s21 = sld [smem:[#allocation14_spill]] }
0x1176   : > { %s4552_s15 = sld [smem:[#allocation16_spill]]  ;;  %s4553_s13 = smov %s3791_s14 }
0x117b   : > { %p24_p7 = scmp.ge.s32.totalorder %s4550_s16, 4   ;;  %s4554_s14 = smov %s4551_s21 }
0x117d   :  { %26 = sbr.rel (!%p24_p7) target bundleno = 8 (0x8), region = 136 }
0x1184   :  { %2780 = vsyncpa [#allocation5], 1 }
0x1185   :  { %2782 = vsyncpa [#allocation5 + $0x1], 1 }
0x1186   :  { %2783 = vsyncpa [#allocation8], 1 }
0x1187   :  { %2785 = vsyncpa [#allocation8 + $0x1], 1 }
0x1188   :  { %2786 = vsyncpa [#allocation6], 1 }
0x1189   :  { %2788 = vsyncpa [#allocation6 + $0x1], 1 }

</bundles_post_ra>
